<compile_context>
chip_gen: v6e
topology: v6e:2x2x1
jax: 0.10.0
libtpu: 0.0.40
codegen_flags: <defaults>
</compile_context>

<pallas_src>
import functools

import jax
import jax.numpy as jnp
from jax import lax
from jax.experimental import pallas as pl
from jax.experimental.pallas import tpu as pltpu


# ----------------------------- Pallas kernels ------------------------------

def _conv4_kernel(y_ref, w_ref, b_ref, o_ref, *, Ho, Wp, relu):
    """Unit-stride 2x2-tap conv (== a 3x3 stride-2 conv after space-to-depth).

    y_ref : (1, (Ho+2)*Wp, C4)  bf16  row-major flattened padded input (+spare row)
    w_ref : (4, C4, Cout)       bf16  tap weights, tap index t = di*2 + dj
    b_ref : (1, Cout)           f32
    o_ref : (1, Ho*Wp, Cout)    bf16  (output columns >= Wo are garbage; caller drops)
    """
    Cout = o_ref.shape[-1]
    Mo = Ho * Wp
    acc = jnp.zeros((Mo, Cout), jnp.float32)
    for t, (di, dj) in enumerate(((0, 0), (0, 1), (1, 0), (1, 1))):
        start = di * Wp + dj                      # static contiguous slice per tap
        a = y_ref[0, start:start + Mo, :]
        acc = acc + jnp.dot(a, w_ref[t], preferred_element_type=jnp.float32)
    acc = acc + b_ref[...]
    if relu:
        acc = jnp.maximum(acc, 0.0)
    o_ref[...] = acc[None].astype(o_ref.dtype)


def _conv_vq_kernel(h_ref, wv_ref, c_ref, o_ref, *, H2, Wp):
    """Fused conv3(3x3,s1) + quant_conv(1x1) + nearest-codebook argmin.

    conv3, quant_conv and the codebook cross term collapse into one 9-tap
    contraction against Wv[t] = w3[t] @ wq @ codebook^T; ||h'||^2 is dropped
    (argmin-invariant).

    h_ref  : (1, (H2+3)*Wp, Cin) bf16  flattened zero-padded conv2 output
    wv_ref : (9, Cin, K)         f32   fused tap weights (kept f32 for index parity)
    c_ref  : (1, K)              f32   ||e_k||^2 - 2*(b3@wq + bq).e_k
    o_ref  : (1, 1, H2*Wp)       int32 (columns >= W2 are garbage; caller drops)
    """
    K = wv_ref.shape[-1]
    M = H2 * Wp
    acc = jnp.zeros((M, K), jnp.float32)
    for i in range(3):
        for j in range(3):
            start = i * Wp + j
            a = h_ref[0, start:start + M, :].astype(jnp.float32)
            acc = acc + jnp.dot(a, wv_ref[i * 3 + j],
                                preferred_element_type=jnp.float32)
    scores = c_ref[...] - 2.0 * acc                       # (M, K), K on lanes
    minv = jnp.min(scores, axis=1, keepdims=True)         # single lane-axis reduce
    iota_k = lax.broadcasted_iota(jnp.int32, scores.shape, 1).astype(jnp.float32)
    cand = jnp.where(scores <= minv, iota_k, jnp.float32(K))
    idx = jnp.min(cand, axis=1)                           # first-min tie break (torch argmin)
    o_ref[...] = idx.reshape(1, 1, M).astype(jnp.int32)   # lane-dense int32 store


# ----------------------------- Pallas wrappers ------------------------------

def _conv4(y_flat, w_taps, b, Ho, Wp, relu):
    B, R, C4 = y_flat.shape
    Cout = w_taps.shape[-1]
    Mo = Ho * Wp
    return pl.pallas_call(
        functools.partial(_conv4_kernel, Ho=Ho, Wp=Wp, relu=relu),
        out_shape=jax.ShapeDtypeStruct((B, Mo, Cout), jnp.bfloat16),
        grid=(B,),
        in_specs=[pl.BlockSpec((1, R, C4), lambda i: (i, 0, 0)),
                  pl.BlockSpec((4, C4, Cout), lambda i: (0, 0, 0)),
                  pl.BlockSpec((1, Cout), lambda i: (0, 0))],
        out_specs=pl.BlockSpec((1, Mo, Cout), lambda i: (i, 0, 0)),
        compiler_params=pltpu.CompilerParams(
            dimension_semantics=("parallel",)),
    )(y_flat.astype(jnp.bfloat16), w_taps.astype(jnp.bfloat16),
      b.reshape(1, -1).astype(jnp.float32))


def _conv_vq(h_flat, wv, const, H2, Wp):
    B, R, Cin = h_flat.shape
    K = wv.shape[-1]
    M = H2 * Wp
    return pl.pallas_call(
        functools.partial(_conv_vq_kernel, H2=H2, Wp=Wp),
        out_shape=jax.ShapeDtypeStruct((B, 1, M), jnp.int32),
        grid=(B,),
        in_specs=[pl.BlockSpec((1, R, Cin), lambda i: (i, 0, 0)),
                  pl.BlockSpec((9, Cin, K), lambda i: (0, 0, 0)),
                  pl.BlockSpec((1, K), lambda i: (0, 0))],
        out_specs=pl.BlockSpec((1, 1, M), lambda i: (i, 0, 0)),
        compiler_params=pltpu.CompilerParams(
            dimension_semantics=("parallel",)),
    )(h_flat.astype(jnp.bfloat16), wv.astype(jnp.float32),
      const.reshape(1, -1).astype(jnp.float32))


# --------------------------- host-side layout prep ---------------------------

def _space_to_depth2(xp):
    """(B, Hp, Wp, C) -> (B, Hp/2, Wp/2, 4C); channel order (p, q, c)."""
    B, Hp, Wp, C = xp.shape
    y = xp.reshape(B, Hp // 2, 2, Wp // 2, 2, C)
    y = jnp.transpose(y, (0, 1, 3, 2, 4, 5))
    return y.reshape(B, Hp // 2, Wp // 2, 4 * C)


def _s2d_weight(w):
    """(3,3,Cin,Cout) -> (4, 4*Cin, Cout): stride-2 3x3 conv as 2x2-tap conv."""
    kh, kw, cin, cout = w.shape
    w4 = jnp.pad(w, ((0, 1), (0, 1), (0, 0), (0, 0)))     # (4, 4, Cin, Cout)
    w4 = w4.reshape(2, 2, 2, 2, cin, cout)                # (di, p, dj, q, ...)
    w4 = jnp.transpose(w4, (0, 2, 1, 3, 4, 5))            # (di, dj, p, q, ...)
    return w4.reshape(4, 4 * cin, cout)


def _flatten_rows(y):
    """(B, R, Wp, C) -> (B, (R+1)*Wp, C): row-major flatten plus one spare zero row."""
    B, R, Wp, C = y.shape
    flat = y.reshape(B, R * Wp, C)
    return jnp.pad(flat, ((0, 0), (0, Wp), (0, 0)))


# ------------------------------- full forward -------------------------------

def encoder_forward(x_nchw, params):
    """Equivalent of Encoder.forward. Input NCHW; returns int32 indices (B, H/4*W/4)."""
    B, C, H, W = x_nchw.shape
    assert H % 4 == 0 and W % 4 == 0
    x = jnp.transpose(x_nchw, (0, 2, 3, 1))                # NCHW -> NHWC

    # ---- conv1 (3x3 s2, ReLU) with `2*x - 1` folded into the weights -------
    # w1' = 2*w1, b1' = b1 - sum(w1); pad raw x with 0.5 (2*0.5 - 1 == 0) so the
    # original affine-then-zero-pad semantics is preserved at the borders.
    w1f = 2.0 * params['w1']
    b1f = params['b1'] - jnp.sum(params['w1'], axis=(0, 1, 2))
    xp = jnp.pad(x, ((0, 0), (1, 1), (1, 1), (0, 0)), constant_values=0.5)
    H1, W1 = H // 2, W // 2
    y1 = _flatten_rows(_space_to_depth2(xp))               # (B, (H1+2)*(W1+1), 4C)
    h1 = _conv4(y1, _s2d_weight(w1f), b1f, H1, W1 + 1, relu=True)
    h1 = h1.reshape(B, H1, W1 + 1, -1)[:, :, :W1, :]       # drop garbage column

    # ---- conv2 (3x3 s2, ReLU) ------------------------------------------------
    h1p = jnp.pad(h1, ((0, 0), (1, 1), (1, 1), (0, 0)))
    H2, W2 = H // 4, W // 4
    y2 = _flatten_rows(_space_to_depth2(h1p))
    h2 = _conv4(y2, _s2d_weight(params['w2']), params['b2'], H2, W2 + 1, relu=True)
    h2 = h2.reshape(B, H2, W2 + 1, -1)[:, :, :W2, :]

    # ---- conv3 (3x3 s1) + quant_conv (1x1) + VQ argmin, fully fused ---------
    h2p = jnp.pad(h2, ((0, 0), (1, 1), (1, 1), (0, 0)))    # zero pad for conv3
    h2f = _flatten_rows(h2p)                                # (B, (H2+3)*(W2+2), Cin)
    cb = params['codebook']                                 # (K, E)
    wf = params['wq'] @ cb.T                                # (Cz, K)
    wv = jnp.matmul(params['w3'].reshape(9, -1, params['w3'].shape[-1]), wf)   # (9, Cin, K)
    const = (jnp.sum(cb * cb, axis=-1)
             - 2.0 * ((params['b3'] @ params['wq'] + params['bq']) @ cb.T))    # (K,)
    idx = _conv_vq(h2f, wv, const, H2, W2 + 2)              # (B, 1, H2*(W2+2))
    idx = idx.reshape(B, H2, W2 + 2)[:, :, :W2]             # drop garbage columns
    # TODO(synk): torch argmin returns int64; int32 is sufficient for codebook ids.
    return idx.reshape(B, -1)                               # indices.view(B, -1)


# ------------------------------- param init ---------------------------------

def make_params(in_ch=3, hidden=32, z_ch=16, embed_dim=16, n_codes=128):
    key = jax.random.PRNGKey(0)
    ks = jax.random.split(key, 9)

    def init(k, shape, scale=0.1):
        return (scale * jax.random.normal(k, shape)).astype(jnp.float32)

    return {
        'w1': init(ks[0], (3, 3, in_ch, hidden)),
        'b1': init(ks[1], (hidden,)),
        'w2': init(ks[2], (3, 3, hidden, hidden)),
        'b2': init(ks[3], (hidden,)),
        'w3': init(ks[4], (3, 3, hidden, z_ch)),
        'b3': init(ks[5], (z_ch,)),
        'wq': init(ks[6], (z_ch, embed_dim)),               # 1x1 quant_conv
        'bq': init(ks[7], (embed_dim,)),
        'codebook': init(ks[8], (n_codes, embed_dim), scale=1.0),
    }


if __name__ == "__main__":
    B, C, H, W = 2, 3, 16, 16
    params = make_params(in_ch=C)
    x = jax.random.uniform(jax.random.PRNGKey(0), (B, C, H, W), dtype=jnp.float32)

    fwd = jax.jit(encoder_forward)
    indices = jax.block_until_ready(fwd(x, params))

    assert indices.shape == (B, (H // 4) * (W // 4)), indices.shape
    assert indices.dtype == jnp.int32
    print("KERNEL_OK")
</pallas_src>

<mosaic_0001>
module attributes {stable_mosaic.version = 11 : i64} {
  func.func @_conv4_kernel(%arg0: i32, %arg1: memref<1x90x12xbf16, #tpu.memory_space<vmem>>, %arg2: memref<4x12x32xbf16, #tpu.memory_space<vmem>>, %arg3: memref<1x32xf32, #tpu.memory_space<vmem>>, %arg4: memref<1x72x32xbf16, #tpu.memory_space<vmem>>) attributes {dimension_semantics = [#tpu.dimension_semantics<parallel>], iteration_bounds = array<i64: 2>, scalar_prefetch = 0 : i64, scratch_operands = 0 : i64, tpu.core_type = #tpu.core_type<tc>, window_params = [{transform_indices = @transform_0, window_bounds = array<i64: 1, 90, 12>}, {pipeline_mode = #tpu.pipeline_mode<synchronous>, transform_indices = @transform_1, window_bounds = array<i64: 4, 12, 32>}, {pipeline_mode = #tpu.pipeline_mode<synchronous>, transform_indices = @transform_2, window_bounds = array<i64: 1, 32>}, {transform_indices = @transform_3, window_bounds = array<i64: 1, 72, 32>}]} {
    %cst = arith.constant 0.000000e+00 : f32
    %0 = vector.broadcast %cst : f32 to vector<72x32xf32>
    %c0 = arith.constant 0 : index
    %c0_0 = arith.constant 0 : index
    %c0_1 = arith.constant 0 : index
    %1 = vector.load %arg1[%c0, %c0_0, %c0_1] : memref<1x90x12xbf16, #tpu.memory_space<vmem>>, vector<1x72x12xbf16>
    %2 = vector.shape_cast %1 : vector<1x72x12xbf16> to vector<72x12xbf16>
    %c0_2 = arith.constant 0 : index
    %c0_3 = arith.constant 0 : index
    %c0_4 = arith.constant 0 : index
    %3 = vector.load %arg2[%c0_2, %c0_3, %c0_4] : memref<4x12x32xbf16, #tpu.memory_space<vmem>>, vector<1x12x32xbf16>
    %4 = vector.shape_cast %3 : vector<1x12x32xbf16> to vector<12x32xbf16>
    %cst_5 = arith.constant dense<0.000000e+00> : vector<72x32xf32>
    %5 = tpu.matmul %2, %4, %cst_5 {dimension_numbers = #tpu.dot_dimension_numbers<[1], [0], [0], [1], [0, 0, 1, 1], [], []>} : vector<72x12xbf16>, vector<12x32xbf16>, vector<72x32xf32> -> vector<72x32xf32>
    %6 = arith.addf %0, %5 : vector<72x32xf32>
    %c0_6 = arith.constant 0 : index
    %c1 = arith.constant 1 : index
    %c0_7 = arith.constant 0 : index
    %7 = vector.load %arg1[%c0_6, %c1, %c0_7] : memref<1x90x12xbf16, #tpu.memory_space<vmem>>, vector<1x72x12xbf16>
    %8 = vector.shape_cast %7 : vector<1x72x12xbf16> to vector<72x12xbf16>
    %c1_8 = arith.constant 1 : index
    %c0_9 = arith.constant 0 : index
    %c0_10 = arith.constant 0 : index
    %9 = vector.load %arg2[%c1_8, %c0_9, %c0_10] : memref<4x12x32xbf16, #tpu.memory_space<vmem>>, vector<1x12x32xbf16>
    %10 = vector.shape_cast %9 : vector<1x12x32xbf16> to vector<12x32xbf16>
    %cst_11 = arith.constant dense<0.000000e+00> : vector<72x32xf32>
    %11 = tpu.matmul %8, %10, %cst_11 {dimension_numbers = #tpu.dot_dimension_numbers<[1], [0], [0], [1], [0, 0, 1, 1], [], []>} : vector<72x12xbf16>, vector<12x32xbf16>, vector<72x32xf32> -> vector<72x32xf32>
    %12 = arith.addf %6, %11 : vector<72x32xf32>
    %c0_12 = arith.constant 0 : index
    %c9 = arith.constant 9 : index
    %c0_13 = arith.constant 0 : index
    %13 = vector.load %arg1[%c0_12, %c9, %c0_13] : memref<1x90x12xbf16, #tpu.memory_space<vmem>>, vector<1x72x12xbf16>
    %14 = vector.shape_cast %13 : vector<1x72x12xbf16> to vector<72x12xbf16>
    %c2 = arith.constant 2 : index
    %c0_14 = arith.constant 0 : index
    %c0_15 = arith.constant 0 : index
    %15 = vector.load %arg2[%c2, %c0_14, %c0_15] : memref<4x12x32xbf16, #tpu.memory_space<vmem>>, vector<1x12x32xbf16>
    %16 = vector.shape_cast %15 : vector<1x12x32xbf16> to vector<12x32xbf16>
    %cst_16 = arith.constant dense<0.000000e+00> : vector<72x32xf32>
    %17 = tpu.matmul %14, %16, %cst_16 {dimension_numbers = #tpu.dot_dimension_numbers<[1], [0], [0], [1], [0, 0, 1, 1], [], []>} : vector<72x12xbf16>, vector<12x32xbf16>, vector<72x32xf32> -> vector<72x32xf32>
    %18 = arith.addf %12, %17 : vector<72x32xf32>
    %c0_17 = arith.constant 0 : index
    %c10 = arith.constant 10 : index
    %c0_18 = arith.constant 0 : index
    %19 = vector.load %arg1[%c0_17, %c10, %c0_18] : memref<1x90x12xbf16, #tpu.memory_space<vmem>>, vector<1x72x12xbf16>
    %20 = vector.shape_cast %19 : vector<1x72x12xbf16> to vector<72x12xbf16>
    %c3 = arith.constant 3 : index
    %c0_19 = arith.constant 0 : index
    %c0_20 = arith.constant 0 : index
    %21 = vector.load %arg2[%c3, %c0_19, %c0_20] : memref<4x12x32xbf16, #tpu.memory_space<vmem>>, vector<1x12x32xbf16>
    %22 = vector.shape_cast %21 : vector<1x12x32xbf16> to vector<12x32xbf16>
    %cst_21 = arith.constant dense<0.000000e+00> : vector<72x32xf32>
    %23 = tpu.matmul %20, %22, %cst_21 {dimension_numbers = #tpu.dot_dimension_numbers<[1], [0], [0], [1], [0, 0, 1, 1], [], []>} : vector<72x12xbf16>, vector<12x32xbf16>, vector<72x32xf32> -> vector<72x32xf32>
    %24 = arith.addf %18, %23 : vector<72x32xf32>
    %c0_22 = arith.constant 0 : index
    %c0_23 = arith.constant 0 : index
    %25 = vector.load %arg3[%c0_22, %c0_23] : memref<1x32xf32, #tpu.memory_space<vmem>>, vector<1x32xf32>
    %26 = vector.broadcast %25 : vector<1x32xf32> to vector<72x32xf32>
    %27 = arith.addf %24, %26 : vector<72x32xf32>
    %cst_24 = arith.constant 0.000000e+00 : f32
    %28 = vector.broadcast %cst_24 : f32 to vector<72x32xf32>
    %29 = arith.maximumf %27, %28 : vector<72x32xf32>
    %30 = vector.shape_cast %29 : vector<72x32xf32> to vector<1x72x32xf32>
    %31 = arith.truncf %30 : vector<1x72x32xf32> to vector<1x72x32xbf16>
    %c0_25 = arith.constant 0 : index
    %c0_26 = arith.constant 0 : index
    %c0_27 = arith.constant 0 : index
    %32 = vector.load %arg4[%c0_25, %c0_26, %c0_27] : memref<1x72x32xbf16, #tpu.memory_space<vmem>>, vector<1x72x32xbf16>
    tpu.vector_store %arg4[%c0_25, %c0_26, %c0_27], %31 {strides = array<i32>} : memref<1x72x32xbf16, #tpu.memory_space<vmem>>, vector<1x72x32xbf16>,
    return
  }
  func.func @transform_0(%arg0: i32) -> (i32, i32, i32) {
    %c0_i32 = arith.constant 0 : i32
    %c0_i32_0 = arith.constant 0 : i32
    %c0_i32_1 = arith.constant 0 : i32
    return %arg0, %c0_i32, %c0_i32_0 : i32, i32, i32
  }
  func.func @transform_1(%arg0: i32) -> (i32, i32, i32) {
    %c0_i32 = arith.constant 0 : i32
    %c0_i32_0 = arith.constant 0 : i32
    %c0_i32_1 = arith.constant 0 : i32
    %c0_i32_2 = arith.constant 0 : i32
    return %c0_i32, %c0_i32_0, %c0_i32_1 : i32, i32, i32
  }
  func.func @transform_2(%arg0: i32) -> (i32, i32) {
    %c0_i32 = arith.constant 0 : i32
    %c0_i32_0 = arith.constant 0 : i32
    %c0_i32_1 = arith.constant 0 : i32
    return %c0_i32, %c0_i32_0 : i32, i32
  }
  func.func @transform_3(%arg0: i32) -> (i32, i32, i32) {
    %c0_i32 = arith.constant 0 : i32
    %c0_i32_0 = arith.constant 0 : i32
    %c0_i32_1 = arith.constant 0 : i32
    return %arg0, %c0_i32, %c0_i32_0 : i32, i32, i32
  }
}

module attributes {stable_mosaic.version = 11 : i64} {
  func.func @_conv4_kernel(%arg0: i32, %arg1: memref<1x30x128xbf16, #tpu.memory_space<vmem>>, %arg2: memref<4x128x32xbf16, #tpu.memory_space<vmem>>, %arg3: memref<1x32xf32, #tpu.memory_space<vmem>>, %arg4: memref<1x20x32xbf16, #tpu.memory_space<vmem>>) attributes {dimension_semantics = [#tpu.dimension_semantics<parallel>], iteration_bounds = array<i64: 2>, scalar_prefetch = 0 : i64, scratch_operands = 0 : i64, tpu.core_type = #tpu.core_type<tc>, window_params = [{transform_indices = @transform_0, window_bounds = array<i64: 1, 30, 128>}, {pipeline_mode = #tpu.pipeline_mode<synchronous>, transform_indices = @transform_1, window_bounds = array<i64: 4, 128, 32>}, {pipeline_mode = #tpu.pipeline_mode<synchronous>, transform_indices = @transform_2, window_bounds = array<i64: 1, 32>}, {transform_indices = @transform_3, window_bounds = array<i64: 1, 20, 32>}]} {
    %cst = arith.constant 0.000000e+00 : f32
    %0 = vector.broadcast %cst : f32 to vector<20x32xf32>
    %c0 = arith.constant 0 : index
    %c0_0 = arith.constant 0 : index
    %c0_1 = arith.constant 0 : index
    %1 = vector.load %arg1[%c0, %c0_0, %c0_1] : memref<1x30x128xbf16, #tpu.memory_space<vmem>>, vector<1x20x128xbf16>
    %2 = vector.shape_cast %1 : vector<1x20x128xbf16> to vector<20x128xbf16>
    %c0_2 = arith.constant 0 : index
    %c0_3 = arith.constant 0 : index
    %c0_4 = arith.constant 0 : index
    %3 = vector.load %arg2[%c0_2, %c0_3, %c0_4] : memref<4x128x32xbf16, #tpu.memory_space<vmem>>, vector<1x128x32xbf16>
    %4 = vector.shape_cast %3 : vector<1x128x32xbf16> to vector<128x32xbf16>
    %cst_5 = arith.constant dense<0.000000e+00> : vector<20x32xf32>
    %5 = tpu.matmul %2, %4, %cst_5 {dimension_numbers = #tpu.dot_dimension_numbers<[1], [0], [0], [1], [0, 0, 1, 1], [], []>} : vector<20x128xbf16>, vector<128x32xbf16>, vector<20x32xf32> -> vector<20x32xf32>
    %6 = arith.addf %0, %5 : vector<20x32xf32>
    %c0_6 = arith.constant 0 : index
    %c1 = arith.constant 1 : index
    %c0_7 = arith.constant 0 : index
    %7 = vector.load %arg1[%c0_6, %c1, %c0_7] : memref<1x30x128xbf16, #tpu.memory_space<vmem>>, vector<1x20x128xbf16>
    %8 = vector.shape_cast %7 : vector<1x20x128xbf16> to vector<20x128xbf16>
    %c1_8 = arith.constant 1 : index
    %c0_9 = arith.constant 0 : index
    %c0_10 = arith.constant 0 : index
    %9 = vector.load %arg2[%c1_8, %c0_9, %c0_10] : memref<4x128x32xbf16, #tpu.memory_space<vmem>>, vector<1x128x32xbf16>
    %10 = vector.shape_cast %9 : vector<1x128x32xbf16> to vector<128x32xbf16>
    %cst_11 = arith.constant dense<0.000000e+00> : vector<20x32xf32>
    %11 = tpu.matmul %8, %10, %cst_11 {dimension_numbers = #tpu.dot_dimension_numbers<[1], [0], [0], [1], [0, 0, 1, 1], [], []>} : vector<20x128xbf16>, vector<128x32xbf16>, vector<20x32xf32> -> vector<20x32xf32>
    %12 = arith.addf %6, %11 : vector<20x32xf32>
    %c0_12 = arith.constant 0 : index
    %c5 = arith.constant 5 : index
    %c0_13 = arith.constant 0 : index
    %13 = vector.load %arg1[%c0_12, %c5, %c0_13] : memref<1x30x128xbf16, #tpu.memory_space<vmem>>, vector<1x20x128xbf16>
    %14 = vector.shape_cast %13 : vector<1x20x128xbf16> to vector<20x128xbf16>
    %c2 = arith.constant 2 : index
    %c0_14 = arith.constant 0 : index
    %c0_15 = arith.constant 0 : index
    %15 = vector.load %arg2[%c2, %c0_14, %c0_15] : memref<4x128x32xbf16, #tpu.memory_space<vmem>>, vector<1x128x32xbf16>
    %16 = vector.shape_cast %15 : vector<1x128x32xbf16> to vector<128x32xbf16>
    %cst_16 = arith.constant dense<0.000000e+00> : vector<20x32xf32>
    %17 = tpu.matmul %14, %16, %cst_16 {dimension_numbers = #tpu.dot_dimension_numbers<[1], [0], [0], [1], [0, 0, 1, 1], [], []>} : vector<20x128xbf16>, vector<128x32xbf16>, vector<20x32xf32> -> vector<20x32xf32>
    %18 = arith.addf %12, %17 : vector<20x32xf32>
    %c0_17 = arith.constant 0 : index
    %c6 = arith.constant 6 : index
    %c0_18 = arith.constant 0 : index
    %19 = vector.load %arg1[%c0_17, %c6, %c0_18] : memref<1x30x128xbf16, #tpu.memory_space<vmem>>, vector<1x20x128xbf16>
    %20 = vector.shape_cast %19 : vector<1x20x128xbf16> to vector<20x128xbf16>
    %c3 = arith.constant 3 : index
    %c0_19 = arith.constant 0 : index
    %c0_20 = arith.constant 0 : index
    %21 = vector.load %arg2[%c3, %c0_19, %c0_20] : memref<4x128x32xbf16, #tpu.memory_space<vmem>>, vector<1x128x32xbf16>
    %22 = vector.shape_cast %21 : vector<1x128x32xbf16> to vector<128x32xbf16>
    %cst_21 = arith.constant dense<0.000000e+00> : vector<20x32xf32>
    %23 = tpu.matmul %20, %22, %cst_21 {dimension_numbers = #tpu.dot_dimension_numbers<[1], [0], [0], [1], [0, 0, 1, 1], [], []>} : vector<20x128xbf16>, vector<128x32xbf16>, vector<20x32xf32> -> vector<20x32xf32>
    %24 = arith.addf %18, %23 : vector<20x32xf32>
    %c0_22 = arith.constant 0 : index
    %c0_23 = arith.constant 0 : index
    %25 = vector.load %arg3[%c0_22, %c0_23] : memref<1x32xf32, #tpu.memory_space<vmem>>, vector<1x32xf32>
    %26 = vector.broadcast %25 : vector<1x32xf32> to vector<20x32xf32>
    %27 = arith.addf %24, %26 : vector<20x32xf32>
    %cst_24 = arith.constant 0.000000e+00 : f32
    %28 = vector.broadcast %cst_24 : f32 to vector<20x32xf32>
    %29 = arith.maximumf %27, %28 : vector<20x32xf32>
    %30 = vector.shape_cast %29 : vector<20x32xf32> to vector<1x20x32xf32>
    %31 = arith.truncf %30 : vector<1x20x32xf32> to vector<1x20x32xbf16>
    %c0_25 = arith.constant 0 : index
    %c0_26 = arith.constant 0 : index
    %c0_27 = arith.constant 0 : index
    %32 = vector.load %arg4[%c0_25, %c0_26, %c0_27] : memref<1x20x32xbf16, #tpu.memory_space<vmem>>, vector<1x20x32xbf16>
    tpu.vector_store %arg4[%c0_25, %c0_26, %c0_27], %31 {strides = array<i32>} : memref<1x20x32xbf16, #tpu.memory_space<vmem>>, vector<1x20x32xbf16>,
    return
  }
  func.func @transform_0(%arg0: i32) -> (i32, i32, i32) {
    %c0_i32 = arith.constant 0 : i32
    %c0_i32_0 = arith.constant 0 : i32
    %c0_i32_1 = arith.constant 0 : i32
    return %arg0, %c0_i32, %c0_i32_0 : i32, i32, i32
  }
  func.func @transform_1(%arg0: i32) -> (i32, i32, i32) {
    %c0_i32 = arith.constant 0 : i32
    %c0_i32_0 = arith.constant 0 : i32
    %c0_i32_1 = arith.constant 0 : i32
    %c0_i32_2 = arith.constant 0 : i32
    return %c0_i32, %c0_i32_0, %c0_i32_1 : i32, i32, i32
  }
  func.func @transform_2(%arg0: i32) -> (i32, i32) {
    %c0_i32 = arith.constant 0 : i32
    %c0_i32_0 = arith.constant 0 : i32
    %c0_i32_1 = arith.constant 0 : i32
    return %c0_i32, %c0_i32_0 : i32, i32
  }
  func.func @transform_3(%arg0: i32) -> (i32, i32, i32) {
    %c0_i32 = arith.constant 0 : i32
    %c0_i32_0 = arith.constant 0 : i32
    %c0_i32_1 = arith.constant 0 : i32
    return %arg0, %c0_i32, %c0_i32_0 : i32, i32, i32
  }
}

module attributes {stable_mosaic.version = 11 : i64} {
  func.func @_conv_vq_kernel(%arg0: i32, %arg1: memref<1x42x32xbf16, #tpu.memory_space<vmem>>, %arg2: memref<9x32x128xf32, #tpu.memory_space<vmem>>, %arg3: memref<1x128xf32, #tpu.memory_space<vmem>>, %arg4: memref<1x1x24xi32, #tpu.memory_space<vmem>>) attributes {dimension_semantics = [#tpu.dimension_semantics<parallel>], iteration_bounds = array<i64: 2>, scalar_prefetch = 0 : i64, scratch_operands = 0 : i64, tpu.core_type = #tpu.core_type<tc>, window_params = [{transform_indices = @transform_0, window_bounds = array<i64: 1, 42, 32>}, {pipeline_mode = #tpu.pipeline_mode<synchronous>, transform_indices = @transform_1, window_bounds = array<i64: 9, 32, 128>}, {pipeline_mode = #tpu.pipeline_mode<synchronous>, transform_indices = @transform_2, window_bounds = array<i64: 1, 128>}, {transform_indices = @transform_3, window_bounds = array<i64: 1, 1, 24>}]} {
    %cst = arith.constant 0.000000e+00 : f32
    %0 = vector.broadcast %cst : f32 to vector<24x128xf32>
    %c0 = arith.constant 0 : index
    %c0_0 = arith.constant 0 : index
    %c0_1 = arith.constant 0 : index
    %1 = vector.load %arg1[%c0, %c0_0, %c0_1] : memref<1x42x32xbf16, #tpu.memory_space<vmem>>, vector<1x24x32xbf16>
    %2 = vector.shape_cast %1 : vector<1x24x32xbf16> to vector<24x32xbf16>
    %3 = arith.extf %2 : vector<24x32xbf16> to vector<24x32xf32>
    %c0_2 = arith.constant 0 : index
    %c0_3 = arith.constant 0 : index
    %c0_4 = arith.constant 0 : index
    %4 = vector.load %arg2[%c0_2, %c0_3, %c0_4] : memref<9x32x128xf32, #tpu.memory_space<vmem>>, vector<1x32x128xf32>
    %5 = vector.shape_cast %4 : vector<1x32x128xf32> to vector<32x128xf32>
    %cst_5 = arith.constant dense<0.000000e+00> : vector<24x128xf32>
    %6 = tpu.matmul %3, %5, %cst_5 {dimension_numbers = #tpu.dot_dimension_numbers<[1], [0], [0], [1], [0, 0, 1, 1], [], []>} : vector<24x32xf32>, vector<32x128xf32>, vector<24x128xf32> -> vector<24x128xf32>
    %7 = arith.addf %0, %6 : vector<24x128xf32>
    %c0_6 = arith.constant 0 : index
    %c1 = arith.constant 1 : index
    %c0_7 = arith.constant 0 : index
    %8 = vector.load %arg1[%c0_6, %c1, %c0_7] : memref<1x42x32xbf16, #tpu.memory_space<vmem>>, vector<1x24x32xbf16>
    %9 = vector.shape_cast %8 : vector<1x24x32xbf16> to vector<24x32xbf16>
    %10 = arith.extf %9 : vector<24x32xbf16> to vector<24x32xf32>
    %c1_8 = arith.constant 1 : index
    %c0_9 = arith.constant 0 : index
    %c0_10 = arith.constant 0 : index
    %11 = vector.load %arg2[%c1_8, %c0_9, %c0_10] : memref<9x32x128xf32, #tpu.memory_space<vmem>>, vector<1x32x128xf32>
    %12 = vector.shape_cast %11 : vector<1x32x128xf32> to vector<32x128xf32>
    %cst_11 = arith.constant dense<0.000000e+00> : vector<24x128xf32>
    %13 = tpu.matmul %10, %12, %cst_11 {dimension_numbers = #tpu.dot_dimension_numbers<[1], [0], [0], [1], [0, 0, 1, 1], [], []>} : vector<24x32xf32>, vector<32x128xf32>, vector<24x128xf32> -> vector<24x128xf32>
    %14 = arith.addf %7, %13 : vector<24x128xf32>
    %c0_12 = arith.constant 0 : index
    %c2 = arith.constant 2 : index
    %c0_13 = arith.constant 0 : index
    %15 = vector.load %arg1[%c0_12, %c2, %c0_13] : memref<1x42x32xbf16, #tpu.memory_space<vmem>>, vector<1x24x32xbf16>
    %16 = vector.shape_cast %15 : vector<1x24x32xbf16> to vector<24x32xbf16>
    %17 = arith.extf %16 : vector<24x32xbf16> to vector<24x32xf32>
    %c2_14 = arith.constant 2 : index
    %c0_15 = arith.constant 0 : index
    %c0_16 = arith.constant 0 : index
    %18 = vector.load %arg2[%c2_14, %c0_15, %c0_16] : memref<9x32x128xf32, #tpu.memory_space<vmem>>, vector<1x32x128xf32>
    %19 = vector.shape_cast %18 : vector<1x32x128xf32> to vector<32x128xf32>
    %cst_17 = arith.constant dense<0.000000e+00> : vector<24x128xf32>
    %20 = tpu.matmul %17, %19, %cst_17 {dimension_numbers = #tpu.dot_dimension_numbers<[1], [0], [0], [1], [0, 0, 1, 1], [], []>} : vector<24x32xf32>, vector<32x128xf32>, vector<24x128xf32> -> vector<24x128xf32>
    %21 = arith.addf %14, %20 : vector<24x128xf32>
    %c0_18 = arith.constant 0 : index
    %c6 = arith.constant 6 : index
    %c0_19 = arith.constant 0 : index
    %22 = vector.load %arg1[%c0_18, %c6, %c0_19] : memref<1x42x32xbf16, #tpu.memory_space<vmem>>, vector<1x24x32xbf16>
    %23 = vector.shape_cast %22 : vector<1x24x32xbf16> to vector<24x32xbf16>
    %24 = arith.extf %23 : vector<24x32xbf16> to vector<24x32xf32>
    %c3 = arith.constant 3 : index
    %c0_20 = arith.constant 0 : index
    %c0_21 = arith.constant 0 : index
    %25 = vector.load %arg2[%c3, %c0_20, %c0_21] : memref<9x32x128xf32, #tpu.memory_space<vmem>>, vector<1x32x128xf32>
    %26 = vector.shape_cast %25 : vector<1x32x128xf32> to vector<32x128xf32>
    %cst_22 = arith.constant dense<0.000000e+00> : vector<24x128xf32>
    %27 = tpu.matmul %24, %26, %cst_22 {dimension_numbers = #tpu.dot_dimension_numbers<[1], [0], [0], [1], [0, 0, 1, 1], [], []>} : vector<24x32xf32>, vector<32x128xf32>, vector<24x128xf32> -> vector<24x128xf32>
    %28 = arith.addf %21, %27 : vector<24x128xf32>
    %c0_23 = arith.constant 0 : index
    %c7 = arith.constant 7 : index
    %c0_24 = arith.constant 0 : index
    %29 = vector.load %arg1[%c0_23, %c7, %c0_24] : memref<1x42x32xbf16, #tpu.memory_space<vmem>>, vector<1x24x32xbf16>
    %30 = vector.shape_cast %29 : vector<1x24x32xbf16> to vector<24x32xbf16>
    %31 = arith.extf %30 : vector<24x32xbf16> to vector<24x32xf32>
    %c4 = arith.constant 4 : index
    %c0_25 = arith.constant 0 : index
    %c0_26 = arith.constant 0 : index
    %32 = vector.load %arg2[%c4, %c0_25, %c0_26] : memref<9x32x128xf32, #tpu.memory_space<vmem>>, vector<1x32x128xf32>
    %33 = vector.shape_cast %32 : vector<1x32x128xf32> to vector<32x128xf32>
    %cst_27 = arith.constant dense<0.000000e+00> : vector<24x128xf32>
    %34 = tpu.matmul %31, %33, %cst_27 {dimension_numbers = #tpu.dot_dimension_numbers<[1], [0], [0], [1], [0, 0, 1, 1], [], []>} : vector<24x32xf32>, vector<32x128xf32>, vector<24x128xf32> -> vector<24x128xf32>
    %35 = arith.addf %28, %34 : vector<24x128xf32>
    %c0_28 = arith.constant 0 : index
    %c8 = arith.constant 8 : index
    %c0_29 = arith.constant 0 : index
    %36 = vector.load %arg1[%c0_28, %c8, %c0_29] : memref<1x42x32xbf16, #tpu.memory_space<vmem>>, vector<1x24x32xbf16>
    %37 = vector.shape_cast %36 : vector<1x24x32xbf16> to vector<24x32xbf16>
    %38 = arith.extf %37 : vector<24x32xbf16> to vector<24x32xf32>
    %c5 = arith.constant 5 : index
    %c0_30 = arith.constant 0 : index
    %c0_31 = arith.constant 0 : index
    %39 = vector.load %arg2[%c5, %c0_30, %c0_31] : memref<9x32x128xf32, #tpu.memory_space<vmem>>, vector<1x32x128xf32>
    %40 = vector.shape_cast %39 : vector<1x32x128xf32> to vector<32x128xf32>
    %cst_32 = arith.constant dense<0.000000e+00> : vector<24x128xf32>
    %41 = tpu.matmul %38, %40, %cst_32 {dimension_numbers = #tpu.dot_dimension_numbers<[1], [0], [0], [1], [0, 0, 1, 1], [], []>} : vector<24x32xf32>, vector<32x128xf32>, vector<24x128xf32> -> vector<24x128xf32>
    %42 = arith.addf %35, %41 : vector<24x128xf32>
    %c0_33 = arith.constant 0 : index
    %c12 = arith.constant 12 : index
    %c0_34 = arith.constant 0 : index
    %43 = vector.load %arg1[%c0_33, %c12, %c0_34] : memref<1x42x32xbf16, #tpu.memory_space<vmem>>, vector<1x24x32xbf16>
    %44 = vector.shape_cast %43 : vector<1x24x32xbf16> to vector<24x32xbf16>
    %45 = arith.extf %44 : vector<24x32xbf16> to vector<24x32xf32>
    %c6_35 = arith.constant 6 : index
    %c0_36 = arith.constant 0 : index
    %c0_37 = arith.constant 0 : index
    %46 = vector.load %arg2[%c6_35, %c0_36, %c0_37] : memref<9x32x128xf32, #tpu.memory_space<vmem>>, vector<1x32x128xf32>
    %47 = vector.shape_cast %46 : vector<1x32x128xf32> to vector<32x128xf32>
    %cst_38 = arith.constant dense<0.000000e+00> : vector<24x128xf32>
    %48 = tpu.matmul %45, %47, %cst_38 {dimension_numbers = #tpu.dot_dimension_numbers<[1], [0], [0], [1], [0, 0, 1, 1], [], []>} : vector<24x32xf32>, vector<32x128xf32>, vector<24x128xf32> -> vector<24x128xf32>
    %49 = arith.addf %42, %48 : vector<24x128xf32>
    %c0_39 = arith.constant 0 : index
    %c13 = arith.constant 13 : index
    %c0_40 = arith.constant 0 : index
    %50 = vector.load %arg1[%c0_39, %c13, %c0_40] : memref<1x42x32xbf16, #tpu.memory_space<vmem>>, vector<1x24x32xbf16>
    %51 = vector.shape_cast %50 : vector<1x24x32xbf16> to vector<24x32xbf16>
    %52 = arith.extf %51 : vector<24x32xbf16> to vector<24x32xf32>
    %c7_41 = arith.constant 7 : index
    %c0_42 = arith.constant 0 : index
    %c0_43 = arith.constant 0 : index
    %53 = vector.load %arg2[%c7_41, %c0_42, %c0_43] : memref<9x32x128xf32, #tpu.memory_space<vmem>>, vector<1x32x128xf32>
    %54 = vector.shape_cast %53 : vector<1x32x128xf32> to vector<32x128xf32>
    %cst_44 = arith.constant dense<0.000000e+00> : vector<24x128xf32>
    %55 = tpu.matmul %52, %54, %cst_44 {dimension_numbers = #tpu.dot_dimension_numbers<[1], [0], [0], [1], [0, 0, 1, 1], [], []>} : vector<24x32xf32>, vector<32x128xf32>, vector<24x128xf32> -> vector<24x128xf32>
    %56 = arith.addf %49, %55 : vector<24x128xf32>
    %c0_45 = arith.constant 0 : index
    %c14 = arith.constant 14 : index
    %c0_46 = arith.constant 0 : index
    %57 = vector.load %arg1[%c0_45, %c14, %c0_46] : memref<1x42x32xbf16, #tpu.memory_space<vmem>>, vector<1x24x32xbf16>
    %58 = vector.shape_cast %57 : vector<1x24x32xbf16> to vector<24x32xbf16>
    %59 = arith.extf %58 : vector<24x32xbf16> to vector<24x32xf32>
    %c8_47 = arith.constant 8 : index
    %c0_48 = arith.constant 0 : index
    %c0_49 = arith.constant 0 : index
    %60 = vector.load %arg2[%c8_47, %c0_48, %c0_49] : memref<9x32x128xf32, #tpu.memory_space<vmem>>, vector<1x32x128xf32>
    %61 = vector.shape_cast %60 : vector<1x32x128xf32> to vector<32x128xf32>
    %cst_50 = arith.constant dense<0.000000e+00> : vector<24x128xf32>
    %62 = tpu.matmul %59, %61, %cst_50 {dimension_numbers = #tpu.dot_dimension_numbers<[1], [0], [0], [1], [0, 0, 1, 1], [], []>} : vector<24x32xf32>, vector<32x128xf32>, vector<24x128xf32> -> vector<24x128xf32>
    %63 = arith.addf %56, %62 : vector<24x128xf32>
    %c0_51 = arith.constant 0 : index
    %c0_52 = arith.constant 0 : index
    %64 = vector.load %arg3[%c0_51, %c0_52] : memref<1x128xf32, #tpu.memory_space<vmem>>, vector<1x128xf32>
    %cst_53 = arith.constant 2.000000e+00 : f32
    %65 = vector.broadcast %cst_53 : f32 to vector<24x128xf32>
    %66 = arith.mulf %65, %63 : vector<24x128xf32>
    %67 = vector.broadcast %64 : vector<1x128xf32> to vector<24x128xf32>
    %68 = arith.subf %67, %66 : vector<24x128xf32>
    %cst_54 = arith.constant dense<0x7F800000> : vector<24xf32>
    %69 = vector.multi_reduction <minimumf>, %68, %cst_54 [1] : vector<24x128xf32> to vector<24xf32>
    %70 = vector.shape_cast %69 : vector<24xf32> to vector<24x1xf32>
    %71 = tpu.iota {dimensions = array<i32: 1>} : vector<24x128xi32>
    %72 = arith.sitofp %71 : vector<24x128xi32> to vector<24x128xf32>
    %73 = vector.broadcast %70 : vector<24x1xf32> to vector<24x128xf32>
    %74 = arith.cmpf ole, %68, %73 : vector<24x128xf32>
    %cst_55 = arith.constant 1.280000e+02 : f32
    %75 = vector.broadcast %cst_55 : f32 to vector<24x128xf32>
    %76 = arith.select %74, %72, %75 : vector<24x128xi1>, vector<24x128xf32>
    %cst_56 = arith.constant dense<0x7F800000> : vector<24xf32>
    %77 = vector.multi_reduction <minimumf>, %76, %cst_56 [1] : vector<24x128xf32> to vector<24xf32>
    %78 = vector.shape_cast %77 : vector<24xf32> to vector<1x1x24xf32>
    %79 = arith.fptosi %78 : vector<1x1x24xf32> to vector<1x1x24xi32>
    %c0_57 = arith.constant 0 : index
    %c0_58 = arith.constant 0 : index
    %c0_59 = arith.constant 0 : index
    %80 = vector.load %arg4[%c0_57, %c0_58, %c0_59] : memref<1x1x24xi32, #tpu.memory_space<vmem>>, vector<1x1x24xi32>
    tpu.vector_store %arg4[%c0_57, %c0_58, %c0_59], %79 {strides = array<i32>} : memref<1x1x24xi32, #tpu.memory_space<vmem>>, vector<1x1x24xi32>,
    return
  }
  func.func @transform_0(%arg0: i32) -> (i32, i32, i32) {
    %c0_i32 = arith.constant 0 : i32
    %c0_i32_0 = arith.constant 0 : i32
    %c0_i32_1 = arith.constant 0 : i32
    return %arg0, %c0_i32, %c0_i32_0 : i32, i32, i32
  }
  func.func @transform_1(%arg0: i32) -> (i32, i32, i32) {
    %c0_i32 = arith.constant 0 : i32
    %c0_i32_0 = arith.constant 0 : i32
    %c0_i32_1 = arith.constant 0 : i32
    %c0_i32_2 = arith.constant 0 : i32
    return %c0_i32, %c0_i32_0, %c0_i32_1 : i32, i32, i32
  }
  func.func @transform_2(%arg0: i32) -> (i32, i32) {
    %c0_i32 = arith.constant 0 : i32
    %c0_i32_0 = arith.constant 0 : i32
    %c0_i32_1 = arith.constant 0 : i32
    return %c0_i32, %c0_i32_0 : i32, i32
  }
  func.func @transform_3(%arg0: i32) -> (i32, i32, i32) {
    %c0_i32 = arith.constant 0 : i32
    %c0_i32_0 = arith.constant 0 : i32
    %c0_i32_1 = arith.constant 0 : i32
    return %arg0, %c0_i32, %c0_i32_0 : i32, i32, i32
  }
}

</mosaic_0001>

<bundles_post_ra>
// kernel: encoder_forward.3
= control target key start
LH: loop header
LB: loop body
LE: loop exit
PB: predicated region body
PF: predicated region fallthrough
CT: control target
= control target key end

     0   :  { %s1110_s12 = smov 0   ;;  %s1299_s0 = inlined_call_operand.vmem [shape: bf16[2,90,12], index: 0, kind: input, shape index: {}]   ;;  %s1300_s1 = inlined_call_operand.vmem [shape: bf16[4,12,32], index: 1, kind: input, shape index: {}]   ;;  %s1301_s2 = inlined_call_operand.vmem [shape: f32[1,32], index: 2, kind: input, shape index: {}]   ;;  %s1302_s3 = inlined_call_operand.vmem [shape: bf16[2,72,32], index: 3, kind: output, shape index: {}]  }
   0x1 LB: > { %s870_s13 = sadd.s32 4294967295, %s1086_s12   ;;  %p874_p0 = scmp.ge.s32.totalorder %s1086_s12, 1  ;;  %s1086_s12 = sphi %s1110_s12, %s13_s12  }
   0x2   : > { %p137_p1 = scmp.lt.s32.totalorder %s1086_s12, 3 }
   0x4   : > { %p138_p2 = pnand %p874_p0, %p137_p1 }
   0x5   : > { %p161_p3 = scmp.lt.s32.totalorder (!%p138_p2), %s870_s13, 1 }
   0x6   : > { %141 = sbr.rel (%p138_p2) target bundleno = 299 (0x12b), region = 32 }
   0xb   : > { %vm273_vm0 = vcmask 1045504   ;;  %v1088_v0 = vmov 0.0   ;;  %v1064_v1 = vld [vmem:[%s1300_s1] sm:$0x3f]   ;;  %vm1089_vm1 = vmmov 0   ;;  %s1304_s13 = smov (!%p161_p3, %s870_s13), 1 }
   0xc   : > { %986 = vmatprep.subr.bf16.mxu1 %v1088_v0  ;;  %964 = vmatprep.subr.bf16.mxu0 %v1088_v0  ;;  %v1065_v2 = vld [vmem:[%s1300_s1 + $0x8] sm:$0x3f]   ;;  %v367_v3 = vsel %vm273_vm0, %v1064_v1, 0  ;;  %s1052_s18 = smul.u32 48, %s1304_s13  ;;  %v1069_v5 = vld [vmem:[%s1300_s1 + $0x18] sm:$0x3f]  }
   0xd   : > { %988 = vmatprep.mubr.msk.bf16.mxu1 %vm1089_vm1, %v1088_v0  ;;  %966 = vmatprep.mubr.msk.bf16.mxu0 %vm1089_vm1, %v1088_v0  ;;  %v275_v4 = vsel %vm273_vm0, %v1065_v2, 0  ;;  %vm257_vm2 = vcmask 97280   ;;  %v660_v7 = vsel %vm273_vm0, %v1069_v5, 0  ;;  %v1068_v12 = vld [vmem:[%s1300_s1 + $0x10] sm:$0x3f]   ;;  %vm629_vm4 = vcmask 1046528  }
   0xe   : > { %987 = vmatpush3.bf16.msra.mxu1 %v367_v3  ;;  %965 = vmatpush3.bf16.msra.mxu0 %v275_v4  ;;  %s1143_s23 = scalar_lea.vmem %s1299_s0, %s1052_s18  ;;  %vm212_vm3 = vsmask.f32 7424  ;;  %v539_v19 = vsel %vm273_vm0, %v1068_v12, 0  ;;  %s1053_s28 = smul.u32 36, %s1304_s13  ;;  %vm805_vm5 = vcmask 257024  }
   0xf   : > { %1030 = vmatprep.subr.bf16.mxu1 %v1088_v0  ;;  %1008 = vmatprep.subr.bf16.mxu0 %v1088_v0  ;;  %v1066_v6 = vld [vmem:[%s1143_s23] sm:$0xff]   ;;  %v1067_v8 = vld [vmem:[%s1143_s23 + $0x8] sm:$0xff]   ;;  %v1070_v13 = vld [vmem:[%s1143_s23 + $0x10] sm:$0xff]  }
  0x10   : > { %v214_v9 = vshrl.u32 %v1066_v6, 16  ;;  %v216_v10 = vshll.u32 %v1066_v6, 16  ;;  %v221_v11 = vshll.u32 %v1067_v8, 16  ;;  %v225_v17 = vshrl.u32 %v1067_v8, 16  ;;  %v1071_v23 = vld [vmem:[%s1143_s23 + $0x18] sm:$0xff]   ;;  %v1075_v43 = vld [vmem:[%s1143_s23 + $0xc] sm:$0xff]   ;;  %s1259_s4 = scalar_lea.vmem %s1302_s3, %s1053_s28 }
  0x11   : > { %989 = vmatmul.mubr.msk.bf16.vlgmr.msra.gmra.mxu1 %vm257_vm2, %v1066_v6  ;;  %v229_v18 = vshll.u32 %v1070_v13, 16  ;;  %v233_v25 = vshrl.u32 %v1070_v13, 16  ;;  %v237_v26 = vshll.u32 %v1071_v23, 16  ;;  %v180_v27 = vld [vmem:[%s1143_s23 + $0x20] sm:$0xf]  ;;  %v241_v33 = vshrl.u32 %v1071_v23, 16 }
  0x12   : > { %1031 = vmatpush3.bf16.msra.mxu1 %v660_v7  ;;  %992 = vmatprep.mubr.msk.bf16.mxu1 %vm1089_vm1, %v1088_v0  ;;  %v218_v14 = vrot.slane %v216_v10, 1  ;;  %v223_v15 = vrot.slane %v221_v11, 1  ;;  %v183_v28 = vld [vmem:[%s1143_s23 + $0x24] sm:$0x1]  ;;  %v442_v38 = vld [vmem:[%s1143_s23 + $0x8] sm:$0xf]  ;;  %v890_v41 = vcombine.low %v180_v27, %v180_v27 }
  0x13   : > { %v231_v22 = vrot.slane %v229_v18, 1  ;;  %v239_v30 = vrot.slane %v237_v26, 1  ;;  %v883_v31 = vcombine.low %v180_v27, %v183_v28  ;;  %v441_v37 = vld [vmem:[%s1143_s23 + $0x4] sm:$0xf]  ;;  %v631_v48 = vrot.slane %v1075_v43, 1  ;;  %v1077_v54 = vld [vmem:[%s1143_s23 + $0x14] sm:$0xff]  }
  0x14   : > { %v219_v16 = vor.u32 %v218_v14, %v214_v9  ;;  %v227_v21 = vor.u32 %v225_v17, %v223_v15  ;;  %v622_v39 = vld [vmem:[%s1143_s23 + $0x4] sm:$0xe]  ;;  %v899_v42 = vcombine.low %v441_v37, %v442_v38  ;;  %v487_v52 = vshll.u32 %v1075_v43, 16  ;;  %v1078_v62 = vld [vmem:[%s1143_s23 + $0x1c] sm:$0xff]  }
  0x15   : > { %v235_v29 = vor.u32 %v233_v25, %v231_v22  ;;  %v245_v34 = vshll.u32 %v883_v31, 16  ;;  %v243_v35 = vor.u32 %v241_v33, %v239_v30  ;;  %v912_v44 = vcombine.low %v622_v39, %v442_v38  ;;  %v1079_v7 = vld [vmem:[%s1143_s23 + $0x24] sm:$0x1f]  }
  0x16   : > { %v224_v20 = vsel %vm212_vm3, %v219_v16, %v223_v15  ;;  %v232_v24 = vsel %vm212_vm3, %v227_v21, %v231_v22  ;;  %v249_v45 = vshrl.u32 %v883_v31, 16  ;;  %v482_v46 = vshll.u32 %v899_v42, 16 }
  0x17   : > { %967 = vmatmul.mubr.msk.bf16.vlgmr.msra.gmra.mxu0 %vm257_vm2, %v224_v20  ;;  %v240_v32 = vsel %vm212_vm3, %v235_v29, %v239_v30  ;;  %v247_v36 = vrot.slane %v245_v34, 1  ;;  %v630_v47 = vrot.slane %v912_v44, 1  ;;  %v480_v50 = vshrl.u32 %v899_v42, 16 }
  0x18   : > { %1009 = vmatpush3.bf16.msra.mxu0 %v539_v19  ;;  %970 = vmatprep.mubr.msk.bf16.mxu0 %vm1089_vm1, %v1088_v0  ;;  %v484_v51 = vrot.slane %v482_v46, 1  ;;  %v489_v56 = vrot.slane %v487_v52, 1  ;;  %v633_v57 = vrot.slane %v1077_v54, 1  ;;  %v491_v59 = vshrl.u32 %v1075_v43, 16 }
  0x19   : > { %993 = vmatmul.mubr.msk.bf16.gmra.mxu1 %vm257_vm2, %v1067_v8  ;;  %v248_v40 = vsel %vm212_vm3, %v243_v35, %v247_v36  ;;  %v251_v49 = vor.u32 %v249_v45, %v247_v36  ;;  %v632_v53 = vsel %vm629_vm4, %v630_v47, %v631_v48  ;;  %v495_v60 = vshll.u32 %v1077_v54, 16 }
  0x1a   : > { %996 = vmatprep.mubr.msk.bf16.mxu1 %vm1089_vm1, %v1088_v0  ;;  %v485_v55 = vor.u32 %v484_v51, %v480_v50  ;;  %v634_v61 = vsel %vm629_vm4, %v631_v48, %v633_v57  ;;  %v493_v63 = vor.u32 %v491_v59, %v489_v56  ;;  %v635_v2 = vrot.slane %v1078_v62, 1 }
  0x1b   : > { %v497_v1 = vrot.slane %v495_v60, 1  ;;  %v499_v4 = vshrl.u32 %v1077_v54, 16  ;;  %v503_v5 = vshll.u32 %v1078_v62, 16  ;;  %v637_v10 = vrot.slane %v1079_v7, 1 }
  0x1c   : > { %v490_v58 = vsel %vm212_vm3, %v485_v55, %v489_v56  ;;  %v636_v6 = vsel %vm629_vm4, %v633_v57, %v635_v2  ;;  %v507_v12 = vshrl.u32 %v1078_v62, 16  ;;  %v515_v18 = vshrl.u32 %v1079_v7, 16 }
  0x1d   : > { %v498_v3 = vsel %vm212_vm3, %v493_v63, %v497_v1  ;;  %v501_v8 = vor.u32 %v499_v4, %v497_v1  ;;  %v505_v9 = vrot.slane %v503_v5, 1  ;;  %v638_v14 = vsel %vm629_vm4, %v635_v2, %v637_v10  ;;  %v1252_v4 = vld [vmem:[%s1301_s2] ss:$0 sm:$0xff] }
  0x1f   : > { %971 = vmatmul.mubr.msk.bf16.gmra.mxu0 %vm257_vm2, %v232_v24  ;;  %v506_v11 = vsel %vm212_vm3, %v501_v8, %v505_v9  ;;  %v509_v15 = vor.u32 %v507_v12, %v505_v9 }
  0x20   : > { %974 = vmatprep.mubr.msk.bf16.mxu0 %vm1089_vm1, %v1088_v0 }
  0x21   : > { %997 = vmatmul.mubr.msk.bf16.gmra.mxu1 %vm257_vm2, %v1070_v13  ;;  %v511_v13 = vshll.u32 %v1079_v7, 16 }
  0x22   : > { %1000 = vmatprep.mubr.msk.bf16.mxu1 %vm1089_vm1, %v1088_v0 }
  0x23   : > { %v513_v16 = vrot.slane %v511_v13, 1 }
  0x25   : > { %v514_v17 = vsel %vm212_vm3, %v509_v15, %v513_v16  ;;  %v517_v19 = vor.u32 %v515_v18, %v513_v16 }
  0x27   : > { %975 = vmatmul.mubr.msk.bf16.gmra.mxu0 %vm257_vm2, %v240_v32 }
  0x28   : > { %978 = vmatprep.mubr.msk.bf16.mxu0 %vm1089_vm1, %v1088_v0 }
  0x29   : > { %1001 = vmatmul.mubr.msk.bf16.gmra.mxu1 %vm257_vm2, %v1071_v23 }
  0x2a   : > { %1004 = vmatprep.mubr.msk.bf16.mxu1 %vm1089_vm1, %v1088_v0 }
  0x2f   : > { %979 = vmatmul.mubr.msk.bf16.gmra.mxu0 %vm257_vm2, %v248_v40 }
  0x30   : > { %982 = vmatprep.mubr.msk.bf16.mxu0 %vm1089_vm1, %v1088_v0 }
  0x31   : > { %1005 = vmatmul.mubr.msk.bf16.gmra.mxu1 %vm257_vm2, %v890_v41 }
  0x32   : > { %1032 = vmatprep.mubr.msk.bf16.mxu1 %vm1089_vm1, %v1088_v0 }
  0x37   : > { %983 = vmatmul.mubr.msk.bf16.gmra.mxu0 %vm257_vm2, %v251_v49 }
  0x38   : > { %1010 = vmatprep.mubr.msk.bf16.mxu0 %vm1089_vm1, %v1088_v0 }
  0x39   : > { %1033 = vmatmul.mubr.msk.bf16.vlgmr.msra.gmra.mxu1 %vm257_vm2, %v632_v53 }
  0x3a   : > { %1036 = vmatprep.mubr.msk.bf16.mxu1 %vm1089_vm1, %v1088_v0 }
  0x3f   : > { %1011 = vmatmul.mubr.msk.bf16.vlgmr.msra.gmra.mxu0 %vm257_vm2, %v490_v58 }
  0x40   : > { %1014 = vmatprep.mubr.msk.bf16.mxu0 %vm1089_vm1, %v1088_v0 }
  0x41   : > { %1037 = vmatmul.mubr.msk.bf16.gmra.mxu1 %vm257_vm2, %v634_v61 }
  0x42   : > { %1040 = vmatprep.mubr.msk.bf16.mxu1 %vm1089_vm1, %v1088_v0 }
  0x47   : > { %1015 = vmatmul.mubr.msk.bf16.gmra.mxu0 %vm257_vm2, %v498_v3 }
  0x48   : > { %1018 = vmatprep.mubr.msk.bf16.mxu0 %vm1089_vm1, %v1088_v0 }
  0x49   : > { %1041 = vmatmul.mubr.msk.bf16.gmra.mxu1 %vm257_vm2, %v636_v6 }
  0x4a   : > { %1044 = vmatprep.mubr.msk.bf16.mxu1 %vm1089_vm1, %v1088_v0 }
  0x4f   : > { %1019 = vmatmul.mubr.msk.bf16.gmra.mxu0 %vm257_vm2, %v506_v11 }
  0x50   : > { %1022 = vmatprep.mubr.msk.bf16.mxu0 %vm1089_vm1, %v1088_v0 }
  0x51   : > { %1045 = vmatmul.mubr.msk.bf16.gmra.mxu1 %vm257_vm2, %v638_v14 }
  0x52   : > { %1048 = vmatprep.mubr.msk.bf16.mxu1 %vm1089_vm1, %v1088_v0 }
  0x57   : > { %1023 = vmatmul.mubr.msk.bf16.gmra.mxu0 %vm257_vm2, %v514_v17 }
  0x58   : > { %1026 = vmatprep.mubr.msk.bf16.mxu0 %vm1089_vm1, %v1088_v0 }
  0x59   : > { %1049 = vmatmul.mubr.msk.bf16.gmra.mxu1 %vm257_vm2, %v637_v10 }
  0x5f   : > { %1027 = vmatmul.mubr.msk.bf16.gmra.mxu0 %vm257_vm2, %v517_v19 }
  0xd1   : > { %v403_v20 = vpop.f32.mrf.mxu1 }
  0xd3   : > { %v990_v21 = vpop.f32.mrf.mxu1 }
  0xd5   : > { %v406_v22 = vpop.f32.mrf.mxu1 }
  0xd7   : > { %v991_v23 = vpop.f32.mrf.mxu1  ;;  %v311_v24 = vpop.f32.mrf.mxu0 }
  0xd8   : > { %v404_v62 = vadd.f32 %v403_v20, %v311_v24 }
  0xd9   : > { %v411_v25 = vpop.f32.mrf.mxu1  ;;  %v968_v26 = vpop.f32.mrf.mxu0 }
  0xdb   : > { %v994_v27 = vpop.f32.mrf.mxu1  ;;  %v314_v28 = vpop.f32.mrf.mxu0 }
  0xdc   : > { %v407_v6 = vadd.f32 %v406_v22, %v314_v28 }
  0xdd   : > { %v414_v29 = vpop.f32.mrf.mxu1  ;;  %v969_v30 = vpop.f32.mrf.mxu0 }
  0xdf   : > { %v995_v31 = vpop.f32.mrf.mxu1  ;;  %v319_v32 = vpop.f32.mrf.mxu0 }
  0xe0   : > { %v412_v14 = vadd.f32 %v411_v25, %v319_v32 }
  0xe1   : > { %v1231_v33 = vpop.f32.mrf.mxu1  ;;  %v972_v34 = vpop.f32.mrf.mxu0 }
  0xe3   : > { %v998_v0 = vpop.f32.mrf.mxu1  ;;  %v322_v35 = vpop.f32.mrf.mxu0 }
  0xe4   : > { %v415_v24 = vadd.f32 %v414_v29, %v322_v35 }
  0xe5   : > { %v1233_v36 = vpop.f32.mrf.mxu1  ;;  %v973_v37 = vpop.f32.mrf.mxu0 }
  0xe7   : > { %v999_v38 = vpop.f32.mrf.mxu1  ;;  %v327_v39 = vpop.f32.mrf.mxu0 }
  0xe8   : > { %v420_v37 = vadd.f32 %v1231_v33, %v327_v39 }
  0xe9   : > { %v1235_v40 = vpop.f32.mrf.mxu1  ;;  %v976_v41 = vpop.f32.mrf.mxu0 }
  0xeb   : > { %v1002_v42 = vpop.f32.mrf.mxu1  ;;  %v1237_v43 = vpop.f32.mrf.mxu0 }
  0xed   : > { %v1239_v44 = vpop.f32.mrf.mxu1  ;;  %v977_v45 = vpop.f32.mrf.mxu0 }
  0xef   : > { %v1003_v46 = vpop.f32.mrf.mxu1  ;;  %v1241_v47 = vpop.f32.mrf.mxu0 }
  0xf1   : > { %v1243_v48 = vpop.f32.mrf.mxu1  ;;  %v980_v49 = vpop.f32.mrf.mxu0 }
  0xf3   : > { %v1006_v50 = vpop.f32.mrf.mxu1  ;;  %v1245_v51 = vpop.f32.mrf.mxu0 }
  0xf5   : > { %v438_v52 = vpop.f32.mrf.mxu1  ;;  %v981_v53 = vpop.f32.mrf.mxu0 }
  0xf6   : > { %v423_v52 = vadd.f32 %v1233_v36, %v1237_v43 }
  0xf7   : > { %v1007_v54 = vpop.f32.mrf.mxu1  ;;  %v1247_v55 = vpop.f32.mrf.mxu0 }
  0xf9   : > { %v696_v56 = vpop.f32.mrf.mxu1  ;;  %v984_v57 = vpop.f32.mrf.mxu0 }
  0xfb   : > { %v1034_v58 = vpop.f32.mrf.mxu1  ;;  %v346_v59 = vpop.f32.mrf.mxu0 }
  0xfd   : > { %v699_v60 = vpop.f32.mrf.mxu1  ;;  %v985_v61 = vpop.f32.mrf.mxu0 }
  0xfe   : > { %v428_v61 = vadd.f32 %v1235_v40, %v1241_v47 }
  0xff   : > { %v1035_v63 = vpop.f32.mrf.mxu1  ;;  %v575_v1 = vpop.f32.mrf.mxu0 }
 0x100   : > { %v613_v2 = vadd.f32 %v575_v1, %v404_v62 }
 0x101   : > { %v704_v3 = vpop.f32.mrf.mxu1  ;;  %v1012_v5 = vpop.f32.mrf.mxu0 }
 0x102   : > { %v734_v7 = vadd.f32 %v696_v56, %v613_v2 }
 0x103   : > { %v1038_v8 = vpop.f32.mrf.mxu1  ;;  %v578_v9 = vpop.f32.mrf.mxu0 }
 0x104   : > { %v750_v10 = vadd.f32 %v1252_v4, %v734_v7  ;;  %v614_v11 = vadd.f32 %v578_v9, %v407_v6  ;;  %v431_v7 = vadd.f32 %v1239_v44, %v1245_v51 }
 0x105   : > { %v707_v12 = vpop.f32.mrf.mxu1  ;;  %v1013_v13 = vpop.f32.mrf.mxu0 }
 0x106   : > { %v759_v15 = vmax.f32 %v750_v10, 0.0  ;;  %v735_v16 = vadd.f32 %v699_v60, %v614_v11 }
 0x107   : > { %v1039_v17 = vpop.f32.mrf.mxu1  ;;  %v583_v18 = vpop.f32.mrf.mxu0 }
 0x108   : > { %v931_v19 = vpack.c.bf16 %v759_v15, %v759_v15  ;;  %v751_v20 = vadd.f32 %v1252_v4, %v735_v16  ;;  %v615_v21 = vadd.f32 %v583_v18, %v412_v14  ;;  %v436_v15 = vadd.f32 %v1243_v48, %v1247_v55 }
 0x109   : > { %v712_v22 = vpop.f32.mrf.mxu1  ;;  %v1016_v23 = vpop.f32.mrf.mxu0 }
 0x10a   : > { %806 = vst.msk [vmem:[%s1259_s4] sm:$0xf] %vm805_vm5, %v931_v19  ;;  %v760_v25 = vmax.f32 %v751_v20, 0.0  ;;  %v736_v26 = vadd.f32 %v704_v3, %v615_v21 }
 0x10b   : > { %v1042_v27 = vpop.f32.mrf.mxu1  ;;  %v586_v28 = vpop.f32.mrf.mxu0 }
 0x10c   : > { %v932_v30 = vpack.c.bf16 %v760_v25, %v760_v25  ;;  %v752_v31 = vadd.f32 %v1252_v4, %v736_v26  ;;  %v616_v32 = vadd.f32 %v586_v28, %v415_v24 }
 0x10d   : > { %v715_v34 = vpop.f32.mrf.mxu1  ;;  %v1017_v0 = vpop.f32.mrf.mxu0 }
 0x10e   : > { %807 = vst.msk [vmem:[%s1259_s4 + $0x4] sm:$0xf] %vm805_vm5, %v932_v30  ;;  %v761_v38 = vmax.f32 %v752_v31, 0.0  ;;  %v737_v41 = vadd.f32 %v707_v12, %v616_v32 }
 0x10f   : > { %v1043_v29 = vpop.f32.mrf.mxu1  ;;  %v591_v35 = vpop.f32.mrf.mxu0 }
 0x110   : > { %v933_v42 = vpack.c.bf16 %v761_v38, %v761_v38  ;;  %v753_v45 = vadd.f32 %v1252_v4, %v737_v41  ;;  %v617_v46 = vadd.f32 %v591_v35, %v420_v37 }
 0x111   : > { %v720_v49 = vpop.f32.mrf.mxu1  ;;  %v1020_v50 = vpop.f32.mrf.mxu0 }
 0x112   : > { %808 = vst.msk [vmem:[%s1259_s4 + $0x8] sm:$0xf] %vm805_vm5, %v933_v42  ;;  %v762_v53 = vmax.f32 %v753_v45, 0.0  ;;  %v738_v33 = vadd.f32 %v712_v22, %v617_v46 }
 0x113   : > { %v1046_v39 = vpop.f32.mrf.mxu1  ;;  %v594_v54 = vpop.f32.mrf.mxu0 }
 0x114   : > { %v934_v56 = vpack.c.bf16 %v762_v53, %v762_v53  ;;  %v754_v57 = vadd.f32 %v1252_v4, %v738_v33  ;;  %v618_v58 = vadd.f32 %v594_v54, %v423_v52 }
 0x115   : > { %v723_v59 = vpop.f32.mrf.mxu1  ;;  %v1021_v60 = vpop.f32.mrf.mxu0 }
 0x116   : > { %809 = vst.msk [vmem:[%s1259_s4 + $0xc] sm:$0xf] %vm805_vm5, %v934_v56  ;;  %v763_v62 = vmax.f32 %v754_v57, 0.0  ;;  %v739_v36 = vadd.f32 %v715_v34, %v618_v58 }
 0x117   : > { %v1047_v43 = vpop.f32.mrf.mxu1  ;;  %v599_v63 = vpop.f32.mrf.mxu0 }
 0x118   : > { %v935_v1 = vpack.c.bf16 %v763_v62, %v763_v62  ;;  %v755_v2 = vadd.f32 %v1252_v4, %v739_v36  ;;  %v619_v3 = vadd.f32 %v599_v63, %v428_v61 }
 0x119   : > { %v728_v5 = vpop.f32.mrf.mxu1  ;;  %v1024_v6 = vpop.f32.mrf.mxu0 }
 0x11a   : > { %810 = vst.msk [vmem:[%s1259_s4 + $0x10] sm:$0xf] %vm805_vm5, %v935_v1  ;;  %v764_v8 = vmax.f32 %v755_v2, 0.0  ;;  %v740_v40 = vadd.f32 %v720_v49, %v619_v3 }
 0x11b   : > { %v1050_v47 = vpop.f32.mrf.mxu1  ;;  %v602_v9 = vpop.f32.mrf.mxu0 }
 0x11c   : > { %v936_v10 = vpack.c.bf16 %v764_v8, %v764_v8  ;;  %v756_v11 = vadd.f32 %v1252_v4, %v740_v40  ;;  %v620_v12 = vadd.f32 %v602_v9, %v431_v7 }
 0x11d   : > { %v731_v13 = vpop.f32.mrf.mxu1  ;;  %v1025_v14 = vpop.f32.mrf.mxu0 }
 0x11e   : > { %811 = vst.msk [vmem:[%s1259_s4 + $0x14] sm:$0xf] %vm805_vm5, %v936_v10  ;;  %v765_v44 = vmax.f32 %v756_v11, 0.0  ;;  %v741_v51 = vadd.f32 %v723_v59, %v620_v12 }
 0x11f   : > { %v1051_v16 = vpop.f32.mrf.mxu1  ;;  %v607_v17 = vpop.f32.mrf.mxu0 }
 0x120   : > { %v937_v18 = vpack.c.bf16 %v765_v44, %v765_v44  ;;  %v757_v19 = vadd.f32 %v1252_v4, %v741_v51  ;;  %v621_v20 = vadd.f32 %v607_v17, %v436_v15 }
 0x121   : > { %v1028_v21 = vpop.f32.mrf.mxu0 }
 0x122   : > { %812 = vst.msk [vmem:[%s1259_s4 + $0x18] sm:$0xf] %vm805_vm5, %v937_v18  ;;  %v766_v22 = vmax.f32 %v757_v19, 0.0  ;;  %v742_v23 = vadd.f32 %v728_v5, %v621_v20 }
 0x123   : > { %v610_v24 = vpop.f32.mrf.mxu0 }
 0x124   : > { %v938_v25 = vpack.c.bf16 %v766_v22, %v766_v22  ;;  %v758_v48 = vadd.f32 %v1252_v4, %v742_v23 }
 0x125   : > { %v1029_v55 = vpop.f32.mrf.mxu0 }
 0x126   : > { %813 = vst.msk [vmem:[%s1259_s4 + $0x1c] sm:$0xf] %vm805_vm5, %v938_v25  ;;  %v767_v26 = vmax.f32 %v758_v48, 0.0 }
 0x128   : > { %v939_v27 = vpack.c.bf16 %v767_v26, %v767_v26 }
 0x12a   : > { %814 = vst.msk [vmem:[%s1259_s4 + $0x20] sm:$0xf] %vm805_vm5, %v939_v27 }
 0x12b PF: > { %s13_s12 = sadd.s32 1, %s1086_s12  }
 0x12c   : > { %p10_p4 = scmp.ge.s32.totalorder %s13_s12, 4  }
 0x12e   :  { %12 = sbr.rel (!%p10_p4) target bundleno = 1 (0x1), region = 65 }

// kernel: encoder_forward.4
= control target key start
LH: loop header
LB: loop body
LE: loop exit
PB: predicated region body
PF: predicated region fallthrough
CT: control target
= control target key end

     0   :  { %s1093_s12 = smov 0   ;;  %s1223_s0 = inlined_call_operand.vmem [shape: bf16[2,30,128], index: 0, kind: input, shape index: {}]   ;;  %s1224_s1 = inlined_call_operand.vmem [shape: bf16[4,128,32], index: 1, kind: input, shape index: {}]   ;;  %s1225_s2 = inlined_call_operand.vmem [shape: f32[1,32], index: 2, kind: input, shape index: {}]   ;;  %s1226_s3 = inlined_call_operand.vmem [shape: bf16[2,20,32], index: 3, kind: output, shape index: {}]  }
   0x1 LB: > { %s794_s13 = sadd.s32 4294967295, %s1071_s12   ;;  %p798_p0 = scmp.ge.s32.totalorder %s1071_s12, 1  ;;  %s1071_s12 = sphi %s1093_s12, %s13_s12  }
   0x2   : > { %p137_p1 = scmp.lt.s32.totalorder %s1071_s12, 3 }
   0x4   : > { %p138_p2 = pnand %p798_p0, %p137_p1 }
   0x5   : > { %p161_p3 = scmp.lt.s32.totalorder (!%p138_p2), %s794_s13, 1 }
   0x6   : > { %141 = sbr.rel (%p138_p2) target bundleno = 286 (0x11e), region = 32 }
   0xb   : > { %v1027_v0 = vld [vmem:[%s1224_s1 + $0x78] sm:$0xff]   ;;  %v1029_v2 = vld [vmem:[%s1224_s1 + $0x70] sm:$0xff]   ;;  %v1031_v4 = vld [vmem:[%s1224_s1 + $0x68] sm:$0xff]   ;;  %s1228_s13 = smov (!%p161_p3, %s794_s13), 1  ;;  %vm217_vm0 = vsmask.f32 7424 }
   0xc   : > { %v1028_v1 = vld [vmem:[%s1224_s1 + $0x38] sm:$0xff]   ;;  %938 = vmatprep.subr.bf16.mxu0 %v1027_v0  ;;  %v1030_v3 = vld [vmem:[%s1224_s1 + $0x30] sm:$0xff]   ;;  %v1032_v5 = vld [vmem:[%s1224_s1 + $0x28] sm:$0xff]   ;;  %s894_s30 = sshll.u32 %s1228_s13, 4  ;;  %vm603_vm1 = vcmask 1044480   ;;  %s1018_s7 = smul.u32 12, %s1228_s13 }
   0xd   : > { %958 = vmatprep.subr.bf16.mxu1 %v1028_v1  ;;  %939 = vmatpush3.bf16.msra.mxu0 %v1027_v0  ;;  %v1033_v6 = vld [vmem:[%s1224_s1 + $0x60] sm:$0xff]   ;;  %v1035_v8 = vld [vmem:[%s1224_s1 + $0x58] sm:$0xff]   ;;  %s1137_s10 = scalar_lea.vmem %s1223_s0, %s894_s30  ;;  %v1037_v10 = vld [vmem:[%s1224_s1 + $0x50] sm:$0xff]   ;;  %vm463_vm2 = vsmask.f32 5376  ;;  %vm737_vm3 = vcmask 254976  }
   0xe   : > { %959 = vmatpush3.bf16.msra.mxu1 %v1028_v1  ;;  %940 = vmatprep.subr.bf16.mxu0 %v1029_v2  ;;  %v1034_v7 = vld [vmem:[%s1224_s1 + $0x20] sm:$0xff]   ;;  %v1036_v9 = vld [vmem:[%s1224_s1 + $0x18] sm:$0xff]   ;;  %v1038_v11 = vld [vmem:[%s1224_s1 + $0x10] sm:$0xff]   ;;  %s170_s11 = scalar_lea.vmem %s1226_s3, %s1018_s7  ;;  %vm734_vm4 = vcmask 257024  }
   0xf   : > { %960 = vmatprep.subr.bf16.mxu1 %v1030_v3  ;;  %v1043_v12 = vld [vmem:[%s1137_s10] sm:$0xff]   ;;  %v1044_v13 = vld [vmem:[%s1137_s10 + $0x8] ss:$0 sps:$4 sm:$0x77]   ;;  %v1046_v26 = vld [vmem:[%s1224_s1 + $0xb8] sm:$0xff]  }
  0x10   : > { %v1039_v14 = vld [vmem:[%s1224_s1 + $0x48] sm:$0xff]   ;;  %v219_v16 = vshrl.u32 %v1043_v12, 16  ;;  %v221_v17 = vshll.u32 %v1043_v12, 16  ;;  %v226_v18 = vshll.u32 %v1044_v13, 16  ;;  %974 = vmatprep.mubr.bf16.mxu1 %v1043_v12  ;;  %v1041_v22 = vld [vmem:[%s1224_s1 + $0x40] sm:$0xff]   ;;  %v230_v25 = vshrl.u32 %v1044_v13, 16 }
  0x11   : > { %941 = vmatpush3.bf16.msra.mxu0 %v1029_v2  ;;  %v1040_v15 = vld [vmem:[%s1224_s1 + $0x8] sm:$0xff]   ;;  %v1042_v23 = vld [vmem:[%s1224_s1] sm:$0xff]   ;;  %v1047_v28 = vld [vmem:[%s1224_s1 + $0xf8] sm:$0xff]  }
  0x12   : > { %961 = vmatpush3.bf16.msra.mxu1 %v1030_v3  ;;  %942 = vmatprep.subr.bf16.mxu0 %v1031_v4  ;;  %v223_v19 = vrot.slane %v221_v17, 1  ;;  %v228_v20 = vrot.slane %v226_v18, 1  ;;  %v1045_v27 = vld [vmem:[%s1137_s10 + $0x8] ss:$0 sps:$4 sm:$0x33]   ;;  %v1048_v30 = vld [vmem:[%s1224_s1 + $0xb0] sm:$0xff]  }
  0x13   : > { %962 = vmatprep.subr.bf16.mxu1 %v1032_v5  ;;  %v1049_v31 = vld [vmem:[%s1224_s1 + $0xf0] sm:$0xff]   ;;  %v1050_v32 = vld [vmem:[%s1224_s1 + $0xa8] sm:$0xff]   ;;  %v432_v33 = vld [vmem:[%s1137_s10] sm:$0xc] }
  0x14   : > { %v224_v21 = vor.u32 %v223_v19, %v219_v16  ;;  %v232_v29 = vor.u32 %v230_v25, %v228_v20  ;;  %v433_v34 = vld [vmem:[%s1137_s10 + $0x4] sm:$0xf]  ;;  %v1063_v36 = vld [vmem:[%s1137_s10 + $0x8] sm:$0x1f]   ;;  %v582_v38 = vld [vmem:[%s1137_s10] sm:$0x8] }
  0x15   : > { %943 = vmatpush3.bf16.msra.mxu0 %v1031_v4  ;;  %v853_v35 = vcombine.low %v432_v33, %v433_v34  ;;  %v1051_v37 = vld [vmem:[%s1224_s1 + $0xe8] sm:$0xff]   ;;  %v473_v41 = vshrl.u32 %v1063_v36, 16  ;;  %v476_v42 = vshll.u32 %v1063_v36, 16  ;;  %v879_v43 = vcombine.low %v582_v38, %v433_v34  ;;  %v1052_v45 = vld [vmem:[%s1224_s1 + $0xa0] sm:$0xff]   ;;  %v1054_v55 = vld [vmem:[%s1224_s1 + $0x98] sm:$0xff]  }
  0x16   : > { %963 = vmatpush3.bf16.msra.mxu1 %v1032_v5  ;;  %944 = vmatprep.subr.bf16.mxu0 %v1033_v6  ;;  %v229_v24 = vsel %vm217_vm0, %v224_v21, %v228_v20  ;;  %v605_v44 = vrot.slane %v1063_v36, 3  ;;  %v1053_v50 = vld [vmem:[%s1224_s1 + $0xe0] sm:$0xff]   ;;  %v1055_v57 = vld [vmem:[%s1224_s1 + $0xd8] sm:$0xff]   ;;  %v1056_v58 = vld [vmem:[%s1224_s1 + $0x90] sm:$0xff]  }
  0x17   : > { %964 = vmatprep.subr.bf16.mxu1 %v1034_v7  ;;  %954 = vmatprep.mubr.bf16.mxu0 %v229_v24  ;;  %v465_v39 = vshrl.u32 %v853_v35, 16  ;;  %v468_v40 = vshll.u32 %v853_v35, 16  ;;  %v475_v48 = vrot.slane %v473_v41, 2  ;;  %v478_v49 = vrot.slane %v476_v42, 3  ;;  %v1057_v59 = vld [vmem:[%s1224_s1 + $0xd0] sm:$0xff]   ;;  %v1058_v60 = vld [vmem:[%s1224_s1 + $0x88] sm:$0xff]  }
  0x18   : > { %v604_v51 = vrot.slane %v879_v43, 3  ;;  %v1059_v61 = vld [vmem:[%s1224_s1 + $0xc8] sm:$0xff]   ;;  %v1060_v62 = vld [vmem:[%s1224_s1 + $0x80] sm:$0xff]  }
  0x19   : > { %945 = vmatpush3.bf16.msra.mxu0 %v1033_v6  ;;  %v467_v46 = vrot.slane %v465_v39, 2  ;;  %v470_v47 = vrot.slane %v468_v40, 3  ;;  %v479_v53 = vor.u32 %v478_v49, %v475_v48  ;;  %v1061_v63 = vld [vmem:[%s1224_s1 + $0xc0] sm:$0xff]  }
  0x1a   : > { %965 = vmatpush3.bf16.msra.mxu1 %v1034_v7  ;;  %946 = vmatprep.subr.bf16.mxu0 %v1035_v8  ;;  %v606_v54 = vsel %vm603_vm1, %v604_v51, %v605_v44  ;;  %v888_v13 = vld [vmem:[%s1225_s2] ss:$0 sm:$0xff] }
  0x1b   : > { %966 = vmatprep.subr.bf16.mxu1 %v1036_v9  ;;  %v471_v52 = vor.u32 %v470_v47, %v467_v46 }
  0x1d   : > { %947 = vmatpush3.bf16.msra.mxu0 %v1035_v8  ;;  %v480_v56 = vsel %vm463_vm2, %v471_v52, %v479_v53 }
  0x1e   : > { %967 = vmatpush3.bf16.msra.mxu1 %v1036_v9  ;;  %948 = vmatprep.subr.bf16.mxu0 %v1037_v10 }
  0x1f   : > { %968 = vmatprep.subr.bf16.mxu1 %v1038_v11 }
  0x21   : > { %949 = vmatpush3.bf16.msra.mxu0 %v1037_v10 }
  0x22   : > { %969 = vmatpush3.bf16.msra.mxu1 %v1038_v11  ;;  %950 = vmatprep.subr.bf16.mxu0 %v1039_v14 }
  0x23   : > { %970 = vmatprep.subr.bf16.mxu1 %v1040_v15 }
  0x25   : > { %951 = vmatpush3.bf16.msra.mxu0 %v1039_v14 }
  0x26   : > { %971 = vmatpush3.bf16.msra.mxu1 %v1040_v15  ;;  %952 = vmatprep.subr.bf16.mxu0 %v1041_v22 }
  0x27   : > { %972 = vmatprep.subr.bf16.mxu1 %v1042_v23 }
  0x29   : > { %953 = vmatpush3.bf16.msra.mxu0 %v1041_v22 }
  0x2a   : > { %973 = vmatpush3.bf16.msra.mxu1 %v1042_v23  ;;  %978 = vmatprep.subr.bf16.mxu0 %v1046_v26 }
  0x2b   : > { %998 = vmatprep.subr.bf16.mxu1 %v1047_v28 }
  0x2c   : > { %955 = vmatmul.mubr.bf16.vlgmr.msra.gmra.mxu0 %v232_v29 }
  0x2d   : > { %975 = vmatmul.mubr.bf16.vlgmr.msra.gmra.mxu1 %v1045_v27  ;;  %979 = vmatpush3.bf16.msra.mxu0 %v1046_v26 }
  0x2e   : > { %999 = vmatpush3.bf16.msra.mxu1 %v1047_v28  ;;  %980 = vmatprep.subr.bf16.mxu0 %v1048_v30 }
  0x2f   : > { %1000 = vmatprep.subr.bf16.mxu1 %v1049_v31  ;;  %994 = vmatprep.mubr.bf16.mxu0 %v480_v56 }
  0x30   : > { %1014 = vmatprep.mubr.bf16.mxu1 %v606_v54 }
  0x31   : > { %981 = vmatpush3.bf16.msra.mxu0 %v1048_v30 }
  0x32   : > { %1001 = vmatpush3.bf16.msra.mxu1 %v1049_v31  ;;  %982 = vmatprep.subr.bf16.mxu0 %v1050_v32 }
  0x33   : > { %1002 = vmatprep.subr.bf16.mxu1 %v1051_v37 }
  0x35   : > { %983 = vmatpush3.bf16.msra.mxu0 %v1050_v32 }
  0x36   : > { %1003 = vmatpush3.bf16.msra.mxu1 %v1051_v37  ;;  %984 = vmatprep.subr.bf16.mxu0 %v1052_v45 }
  0x37   : > { %1004 = vmatprep.subr.bf16.mxu1 %v1053_v50 }
  0x39   : > { %985 = vmatpush3.bf16.msra.mxu0 %v1052_v45 }
  0x3a   : > { %1005 = vmatpush3.bf16.msra.mxu1 %v1053_v50  ;;  %986 = vmatprep.subr.bf16.mxu0 %v1054_v55 }
  0x3b   : > { %1006 = vmatprep.subr.bf16.mxu1 %v1055_v57 }
  0x3d   : > { %987 = vmatpush3.bf16.msra.mxu0 %v1054_v55 }
  0x3e   : > { %1007 = vmatpush3.bf16.msra.mxu1 %v1055_v57  ;;  %988 = vmatprep.subr.bf16.mxu0 %v1056_v58 }
  0x3f   : > { %1008 = vmatprep.subr.bf16.mxu1 %v1057_v59 }
  0x41   : > { %989 = vmatpush3.bf16.msra.mxu0 %v1056_v58 }
  0x42   : > { %1009 = vmatpush3.bf16.msra.mxu1 %v1057_v59  ;;  %990 = vmatprep.subr.bf16.mxu0 %v1058_v60 }
  0x43   : > { %1010 = vmatprep.subr.bf16.mxu1 %v1059_v61 }
  0x45   : > { %991 = vmatpush3.bf16.msra.mxu0 %v1058_v60 }
  0x46   : > { %1011 = vmatpush3.bf16.msra.mxu1 %v1059_v61  ;;  %992 = vmatprep.subr.bf16.mxu0 %v1060_v62 }
  0x47   : > { %1012 = vmatprep.subr.bf16.mxu1 %v1061_v63 }
  0x49   : > { %993 = vmatpush3.bf16.msra.mxu0 %v1060_v62 }
  0x4a   : > { %1013 = vmatpush3.bf16.msra.mxu1 %v1061_v63 }
  0x4c   : > { %995 = vmatmul.mubr.bf16.vlgmr.msra.gmra.mxu0 %v479_v53 }
  0x4d   : > { %1015 = vmatmul.mubr.bf16.vlgmr.msra.gmra.mxu1 %v605_v44 }
  0xec   : > { %v956_v0 = vpop.f32.mrf.mxu0 }
  0xed   : > { %v976_v1 = vpop.f32.mrf.mxu1 }
  0xee   : > { %v317_v2 = vpop.f32.mrf.mxu0  ;;  %v427_v7 = vadd.f32 %v976_v1, %v956_v0 }
  0xef   : > { %v418_v3 = vpop.f32.mrf.mxu1 }
  0xf0   : > { %v957_v4 = vpop.f32.mrf.mxu0  ;;  %v419_v10 = vadd.f32 %v418_v3, %v317_v2 }
  0xf1   : > { %v977_v5 = vpop.f32.mrf.mxu1 }
  0xf2   : > { %v320_v6 = vpop.f32.mrf.mxu0 }
  0xf3   : > { %v421_v8 = vpop.f32.mrf.mxu1 }
  0xf4   : > { %v422_v19 = vadd.f32 %v421_v8, %v320_v6 }
 0x10c   : > { %v996_v9 = vpop.f32.mrf.mxu0 }
 0x10d   : > { %v581_v11 = vadd.f32 %v996_v9, %v427_v7  ;;  %v1016_v12 = vpop.f32.mrf.mxu1 }
 0x10e   : > { %v565_v14 = vpop.f32.mrf.mxu0 }
 0x10f   : > { %v707_v15 = vadd.f32 %v1016_v12, %v581_v11  ;;  %v579_v16 = vadd.f32 %v565_v14, %v419_v10  ;;  %v691_v17 = vpop.f32.mrf.mxu1 }
 0x110   : > { %v997_v18 = vpop.f32.mrf.mxu0 }
 0x111   : > { %v717_v20 = vadd.f32 %v888_v13, %v707_v15  ;;  %v705_v21 = vadd.f32 %v691_v17, %v579_v16  ;;  %v1017_v22 = vpop.f32.mrf.mxu1 }
 0x112   : > { %v568_v23 = vpop.f32.mrf.mxu0 }
 0x113   : > { %v720_v24 = vmax.f32 %v717_v20, 0.0  ;;  %v715_v25 = vadd.f32 %v888_v13, %v705_v21  ;;  %v580_v26 = vadd.f32 %v568_v23, %v422_v19  ;;  %v694_v27 = vpop.f32.mrf.mxu1 }
 0x115   : > { %v897_v28 = vpack.c.bf16 %v720_v24, %v720_v24  ;;  %v718_v29 = vmax.f32 %v715_v25, 0.0  ;;  %v706_v30 = vadd.f32 %v694_v27, %v580_v26 }
 0x117   : > { %738 = vst.msk [vmem:[%s170_s11 + $0x8] sm:$0x3] %vm737_vm3, %v897_v28  ;;  %v895_v31 = vpack.c.bf16 %v718_v29, %v718_v29  ;;  %v716_v32 = vadd.f32 %v888_v13, %v706_v30 }
 0x119   : > { %735 = vst.msk [vmem:[%s170_s11] sm:$0xf] %vm734_vm4, %v895_v31  ;;  %v719_v33 = vmax.f32 %v716_v32, 0.0 }
 0x11b   : > { %v896_v34 = vpack.c.bf16 %v719_v33, %v719_v33 }
 0x11d   : > { %736 = vst.msk [vmem:[%s170_s11 + $0x4] sm:$0xf] %vm734_vm4, %v896_v34 }
 0x11e PF: > { %s13_s12 = sadd.s32 1, %s1071_s12  }
 0x11f   : > { %p10_p4 = scmp.ge.s32.totalorder %s13_s12, 4  }
 0x121   :  { %12 = sbr.rel (!%p10_p4) target bundleno = 1 (0x1), region = 65 }

// kernel: encoder_forward.5
= control target key start
LH: loop header
LB: loop body
LE: loop exit
PB: predicated region body
PF: predicated region fallthrough
CT: control target
= control target key end

     0   :  { %s1552_s12 = smov 0   ;;  %s1883_s0 = inlined_call_operand.vmem [shape: bf16[2,42,32], index: 0, kind: input, shape index: {}]   ;;  %s1884_s1 = inlined_call_operand.vmem [shape: f32[9,32,128], index: 1, kind: input, shape index: {}]   ;;  %s1885_s2 = inlined_call_operand.vmem [shape: f32[1,128], index: 2, kind: input, shape index: {}]   ;;  %s1886_s3 = inlined_call_operand.vmem [shape: s32[2,1,24], index: 3, kind: output, shape index: {}]  }
   0x1 LB: > { %s1204_s13 = sadd.s32 4294967295, %s1528_s12   ;;  %p1208_p0 = scmp.ge.s32.totalorder %s1528_s12, 1  ;;  %s1528_s12 = sphi %s1552_s12, %s13_s12  }
   0x2   : > { %p137_p1 = scmp.lt.s32.totalorder %s1528_s12, 3 }
   0x4   : > { %p138_p2 = pnand %p1208_p0, %p137_p1 }
   0x5   : > { %p159_p3 = scmp.lt.s32.totalorder (!%p138_p2), %s1204_s13, 1 }
   0x6   : > { %141 = sbr.rel (%p138_p2) target bundleno = 568 (0x238), region = 32 }
   0xb   : > { %v1213_v0 = vld [vmem:[%s1884_s1 + $0x38] sm:$0xff]  ;;  %v1530_v1 = vmov 0.0   ;;  %v1212_v2 = vld [vmem:[%s1884_s1 + $0x30] sm:$0xff]  ;;  %s1888_s13 = smov (!%p159_p3, %s1204_s13), 1  ;;  %v1211_v3 = vld [vmem:[%s1884_s1 + $0x28] sm:$0xff]  ;;  %vm1531_vm0 = vmmov 0  }
   0xc   : > { %1497 = vmatprep.subr.mxu1 %v1530_v1  ;;  %1344 = vmatprep.subr.mxu0 %v1530_v1  ;;  %s1505_s20 = smul.u32 24, %s1888_s13  ;;  %v1210_v4 = vld [vmem:[%s1884_s1 + $0x20] sm:$0xff]  ;;  %vm188_vm1 = vcmask 1046528   ;;  %vm196_vm2 = vcmask 261120   ;;  %v176_v17 = vld [vmem:[%s1884_s1 + $0x18] sm:$0xff]  ;;  %v175_v21 = vld [vmem:[%s1884_s1 + $0x10] sm:$0xff] }
   0xd   : > { %1501 = vmatpush3.msra.mxu1 %v1213_v0  ;;  %1345 = vmatpush3.msra.mxu0 %v1213_v0  ;;  %v1223_v18 = vld [vmem:[%s1884_s1 + $0x58] sm:$0xff]  ;;  %v1222_v23 = vld [vmem:[%s1884_s1 + $0x50] sm:$0xff]  ;;  %v174_v25 = vld [vmem:[%s1884_s1 + $0x8] sm:$0xff]  ;;  %vm377_vm3 = vcmask 1045504   ;;  %vm485_vm4 = vcmask 1041408   ;;  %vm590_vm5 = vcmask 1040384  }
   0xe   : > { %1498 = vmatprep.subr.mxu1 %v1530_v1  ;;  %1346 = vmatprep.subr.mxu0 %v1530_v1  ;;  %s1584_s25 = scalar_lea.vmem %s1883_s0, %s1505_s20  ;;  %v1221_v26 = vld [vmem:[%s1884_s1 + $0x48] sm:$0xff]  ;;  %v173_v27 = vld [vmem:[%s1884_s1] sm:$0xff]  ;;  %v1230_v32 = vld [vmem:[%s1884_s1 + $0x78] sm:$0xff]  ;;  %vm794_vm6 = vcmask 1043456   ;;  %vm899_vm7 = vcmask 1042432   ;;  %vm1146_vm11 = vcmask 130112   ;;  %s166_s20 = scalar_lea.vmem %s1886_s3, %s1888_s13 }
   0xf   : > { %1502 = vmatpush3.msra.mxu1 %v1212_v2  ;;  %1347 = vmatpush3.msra.mxu0 %v1212_v2  ;;  %v1273_v5 = vld [vmem:[%s1584_s25] sm:$0xff]   ;;  %v1590_v6 = vld [vmem:[%s1584_s25 + $0x8] sm:$0xff]   ;;  %v1237_v35 = vld [vmem:[%s1884_s1 + $0x98] sm:$0xff]  ;;  %vm1153_vm12 = vcmask 195712   ;;  %vm1155_vm13 = vcmask 188416  }
  0x10   : > { %1499 = vmatprep.subr.mxu1 %v1530_v1  ;;  %1348 = vmatprep.subr.mxu0 %v1530_v1  ;;  %v1593_v7 = vld [vmem:[%s1584_s25 + $0xc] sm:$0x1]  ;;  %v1274_v8 = vunpack.c.l.bf16 %v1273_v5  ;;  %v1595_v9 = vunpack.c.h.bf16 %v1273_v5  ;;  %v1598_v10 = vunpack.c.l.bf16 %v1590_v6  ;;  %v369_v16 = vld [vmem:[%s1584_s25] sm:$0xe]  ;;  %v1229_v36 = vld [vmem:[%s1884_s1 + $0x70] sm:$0xff]  ;;  %v583_v57 = vunpack.c.h.bf16 %v1590_v6 }
  0x11   : > { %1503 = vmatpush3.msra.mxu1 %v1211_v3  ;;  %1349 = vmatpush3.msra.mxu0 %v1211_v3  ;;  %v178_v11 = vunpack.c.l.bf16 %v1593_v7  ;;  %v370_v22 = vunpack.c.l.bf16 %v369_v16  ;;  %v1220_v30 = vld [vmem:[%s1884_s1 + $0x40] sm:$0xff]  ;;  %v1236_v40 = vld [vmem:[%s1884_s1 + $0x90] sm:$0xff]  ;;  %v1228_v41 = vld [vmem:[%s1884_s1 + $0x68] sm:$0xff] }
  0x12   : > { %1500 = vmatprep.subr.mxu1 %v1530_v1  ;;  %1350 = vmatprep.subr.mxu0 %v1530_v1  ;;  %v189_v12 = vrot.slane %v1274_v8, 1  ;;  %v190_v13 = vrot.slane %v1595_v9, 1  ;;  %v192_v14 = vrot.slane %v1598_v10, 1  ;;  %v379_v29 = vrot.slane %v1595_v9, 2  ;;  %v474_v34 = vld [vmem:[%s1584_s25] sm:$0x8] }
  0x13   : > { %1504 = vmatpush3.msra.mxu1 %v1210_v4  ;;  %1351 = vmatpush3.msra.mxu0 %v1210_v4  ;;  %v194_v15 = vrot.slane %v178_v11, 1  ;;  %v378_v28 = vrot.slane %v370_v22, 2  ;;  %v381_v33 = vrot.slane %v1598_v10, 2  ;;  %v476_v38 = vunpack.c.l.bf16 %v474_v34  ;;  %v1235_v45 = vld [vmem:[%s1884_s1 + $0x88] sm:$0xff]  ;;  %v1227_v46 = vld [vmem:[%s1884_s1 + $0x60] sm:$0xff]  ;;  %v1244_v54 = vld [vmem:[%s1884_s1 + $0xb8] sm:$0xff] }
  0x14   : > { %1352 = vmatprep.mubr.msk.f32.mxu0 %vm1531_vm0, %v1530_v1  ;;  %1358 = vmatprep.mubr.msk.f32.mxu1 %vm1531_vm0, %v1530_v1  ;;  %v191_v19 = vsel %vm188_vm1, %v189_v12, %v190_v13  ;;  %v193_v24 = vsel %vm188_vm1, %v190_v13, %v192_v14  ;;  %v383_v39 = vrot.slane %v178_v11, 2  ;;  %v487_v43 = vrot.slane %v1595_v9, 6  ;;  %v475_v49 = vld [vmem:[%s1584_s25 + $0xc] sm:$0x7]  ;;  %v1234_v51 = vld [vmem:[%s1884_s1 + $0x80] sm:$0xff]  ;;  %v1251_v58 = vld [vmem:[%s1884_s1 + $0xd8] sm:$0xff] }
  0x15   : > { %1361 = vmatprep.subr.mxu1 %v1530_v1  ;;  %1378 = vmatprep.subr.mxu0 %v1530_v1  ;;  %v195_v20 = vsel %vm188_vm1, %v192_v14, %v194_v15  ;;  %v380_v31 = vsel %vm377_vm3, %v378_v28, %v379_v29  ;;  %v382_v37 = vsel %vm377_vm3, %v379_v29, %v381_v33  ;;  %v486_v42 = vrot.slane %v476_v38, 6  ;;  %v1733_v60 = vld [vmem:[%s1584_s25 + $0x4] sm:$0xc]  ;;  %v1280_v61 = vld [vmem:[%s1584_s25 + $0x8] sm:$0xff]   ;;  %v1243_v62 = vld [vmem:[%s1884_s1 + $0xb0] sm:$0xff] }
  0x16   : > { %1353 = vmatmul.mubr.msk.f32.vlgmr.msra.gmra.mxu0 %vm196_vm2, %v191_v19  ;;  %1359 = vmatmul.mubr.msk.f32.vlgmr.msra.gmra.mxu1 %vm196_vm2, %v195_v20  ;;  %v384_v44 = vsel %vm377_vm3, %v381_v33, %v383_v39  ;;  %v591_v47 = vrot.slane %v476_v38, 7  ;;  %v592_v48 = vrot.slane %v1595_v9, 7  ;;  %v489_v52 = vrot.slane %v1598_v10, 6  ;;  %v1250_v3 = vld [vmem:[%s1884_s1 + $0xd0] sm:$0xff]  ;;  %v1242_v7 = vld [vmem:[%s1884_s1 + $0xa8] sm:$0xff]  ;;  %v1241_v13 = vld [vmem:[%s1884_s1 + $0xa0] sm:$0xff] }
  0x17   : > { %1362 = vmatpush3.msra.mxu1 %v176_v17  ;;  %1379 = vmatpush3.msra.mxu0 %v1223_v18  ;;  %v488_v50 = vsel %vm485_vm4, %v486_v42, %v487_v43  ;;  %v594_v55 = vrot.slane %v1598_v10, 7  ;;  %v477_v56 = vunpack.c.l.bf16 %v475_v49  ;;  %v596_v2 = vrot.slane %v583_v57, 7  ;;  %v1249_v12 = vld [vmem:[%s1884_s1 + $0xc8] sm:$0xff]  ;;  %v1248_v17 = vld [vmem:[%s1884_s1 + $0xc0] sm:$0xff]  ;;  %v780_v18 = vld [vmem:[%s1584_s25 + $0x10] sm:$0x3] }
  0x18   : > { %1363 = vmatprep.subr.mxu1 %v1530_v1  ;;  %1380 = vmatprep.subr.mxu0 %v1530_v1  ;;  %v593_v53 = vsel %vm590_vm5, %v591_v47, %v592_v48  ;;  %v490_v59 = vsel %vm485_vm4, %v487_v43, %v489_v52  ;;  %v1752_v4 = vunpack.c.l.bf16 %v1280_v61  ;;  %v781_v5 = vunpack.c.l.bf16 %v1733_v60  ;;  %v1258_v20 = vld [vmem:[%s1884_s1 + $0xf8] sm:$0xff]  ;;  %v1256_v29 = vld [vmem:[%s1884_s1 + $0xe8] sm:$0xff]  ;;  %v1255_v34 = vld [vmem:[%s1884_s1 + $0xe0] sm:$0xff] }
  0x19   : > { %1364 = vmatpush3.msra.mxu1 %v175_v21  ;;  %1355 = vmatprep.mubr.msk.f32.mxu0 %vm1531_vm0, %v1530_v1  ;;  %v595_v63 = vsel %vm590_vm5, %v592_v48, %v594_v55  ;;  %v491_v0 = vrot.slane %v477_v56, 6  ;;  %v597_v11 = vsel %vm590_vm5, %v594_v55, %v596_v2  ;;  %v1774_v16 = vunpack.c.h.bf16 %v1280_v61  ;;  %v1263_v33 = vld [vmem:[%s1884_s1 + $0x108] sm:$0xff]  ;;  %v1262_v38 = vld [vmem:[%s1884_s1 + $0x100] sm:$0xff] }
  0x1a   : > { %1365 = vmatprep.subr.mxu1 %v1530_v1  ;;  %1381 = vmatpush3.msra.mxu0 %v1222_v23  ;;  %v795_v14 = vrot.slane %v781_v5, 4  ;;  %v796_v15 = vrot.slane %v1752_v4, 4  ;;  %v784_v22 = vunpack.c.l.bf16 %v780_v18  ;;  %v1265_v23 = vld [vmem:[%s1884_s1 + $0x118] sm:$0xff] }
  0x1b   : > { %1356 = vmatmul.mubr.msk.f32.gmra.mxu0 %vm196_vm2, %v193_v24  ;;  %1366 = vmatpush3.msra.mxu1 %v174_v25  ;;  %v798_v21 = vrot.slane %v1774_v16, 4  ;;  %v996_v24 = vld [vmem:[%s1584_s25 + $0x4] sm:$0x8]  ;;  %v903_v39 = vrot.slane %v1774_v16, 5 }
  0x1c   : > { %1382 = vmatprep.subr.mxu0 %v1530_v1  ;;  %1367 = vmatprep.subr.mxu1 %v1530_v1  ;;  %v797_v19 = vsel %vm794_vm6, %v795_v14, %v796_v15  ;;  %v997_v28 = vunpack.c.l.bf16 %v996_v24 }
  0x1d   : > { %1383 = vmatpush3.msra.mxu0 %v1221_v26  ;;  %1368 = vmatpush3.msra.mxu1 %v173_v27  ;;  %v799_v25 = vsel %vm794_vm6, %v796_v15, %v798_v21  ;;  %v800_v26 = vrot.slane %v784_v22, 4  ;;  %v1264_v27 = vld [vmem:[%s1884_s1 + $0x110] sm:$0xff] }
  0x1e   : > { %1369 = vmatprep.mubr.msk.f32.mxu1 %vm1531_vm0, %v1530_v1  ;;  %1384 = vmatprep.subr.mxu0 %v1530_v1 }
  0x1f   : > { %1370 = vmatmul.mubr.msk.f32.vlgmr.msra.gmra.mxu1 %vm196_vm2, %v1274_v8  ;;  %1385 = vmatpush3.msra.mxu0 %v1220_v30  ;;  %v492_v8 = vsel %vm485_vm4, %v489_v52, %v491_v0  ;;  %v901_v30 = vrot.slane %v1752_v4, 5 }
  0x20   : > { %1386 = vmatprep.mubr.msk.f32.mxu0 %vm1531_vm0, %v1530_v1  ;;  %1395 = vmatprep.subr.mxu1 %v1530_v1 }
  0x21   : > { %1387 = vmatmul.mubr.msk.f32.vlgmr.msra.gmra.mxu0 %vm196_vm2, %v380_v31  ;;  %1396 = vmatpush3.msra.mxu1 %v1230_v32  ;;  %v801_v31 = vsel %vm794_vm6, %v798_v21, %v800_v26  ;;  %v891_v32 = vld [vmem:[%s1584_s25 + $0x10] sm:$0x7]  ;;  %v904_v42 = vsel %vm899_vm7, %v901_v30, %v903_v39 }
  0x22   : > { %1412 = vmatprep.subr.mxu0 %v1530_v1  ;;  %1372 = vmatprep.mubr.msk.f32.mxu1 %vm1531_vm0, %v1530_v1 }
  0x23   : > { %1397 = vmatprep.subr.mxu1 %v1530_v1  ;;  %1413 = vmatpush3.msra.mxu0 %v1237_v35  ;;  %v1004_v35 = vrot.slane %v997_v28, 6 }
  0x24   : > { %1373 = vmatmul.mubr.msk.f32.gmra.mxu1 %vm196_vm2, %v1595_v9  ;;  %1389 = vmatprep.mubr.msk.f32.mxu0 %vm1531_vm0, %v1530_v1 }
  0x25   : > { %1398 = vmatpush3.msra.mxu1 %v1229_v36  ;;  %1390 = vmatmul.mubr.msk.f32.gmra.mxu0 %vm196_vm2, %v382_v37  ;;  %v1005_v36 = vrot.slane %v1752_v4, 6 }
  0x26   : > { %1414 = vmatprep.subr.mxu0 %v1530_v1  ;;  %1399 = vmatprep.subr.mxu1 %v1530_v1 }
  0x27   : > { %1415 = vmatpush3.msra.mxu0 %v1236_v40  ;;  %1375 = vmatprep.mubr.msk.f32.mxu1 %vm1531_vm0, %v1530_v1  ;;  %v892_v40 = vunpack.c.l.bf16 %v891_v32  ;;  %v1006_v6 = vsel %vm485_vm4, %v1004_v35, %v1005_v36 }
  0x28   : > { %1400 = vmatpush3.msra.mxu1 %v1228_v41  ;;  %1392 = vmatprep.mubr.msk.f32.mxu0 %vm1531_vm0, %v1530_v1  ;;  %v1007_v41 = vrot.slane %v1774_v16, 6 }
  0x29   : > { %1376 = vmatmul.mubr.msk.f32.gmra.mxu1 %vm196_vm2, %v1598_v10  ;;  %1416 = vmatprep.subr.mxu0 %v1530_v1  ;;  %v905_v43 = vrot.slane %v892_v40, 5 }
  0x2a   : > { %1393 = vmatmul.mubr.msk.f32.gmra.mxu0 %vm196_vm2, %v384_v44  ;;  %1401 = vmatprep.subr.mxu1 %v1530_v1  ;;  %v1008_v44 = vsel %vm485_vm4, %v1005_v36, %v1007_v41 }
  0x2b   : > { %1417 = vmatpush3.msra.mxu0 %v1235_v45  ;;  %1402 = vmatpush3.msra.mxu1 %v1227_v46  ;;  %v1009_v45 = vrot.slane %v892_v40, 6  ;;  %v906_v46 = vsel %vm899_vm7, %v903_v39, %v905_v43 }
  0x2c   : > { %1403 = vmatprep.mubr.msk.f32.mxu1 %vm1531_vm0, %v1530_v1  ;;  %1418 = vmatprep.subr.mxu0 %v1530_v1 }
  0x2d   : > { %1404 = vmatmul.mubr.msk.f32.vlgmr.msra.gmra.mxu1 %vm196_vm2, %v488_v50  ;;  %1419 = vmatpush3.msra.mxu0 %v1234_v51  ;;  %v1010_v47 = vsel %vm485_vm4, %v1007_v41, %v1009_v45 }
  0x2e   : > { %1420 = vmatprep.mubr.msk.f32.mxu0 %vm1531_vm0, %v1530_v1  ;;  %1429 = vmatprep.subr.mxu1 %v1530_v1 }
  0x2f   : > { %1421 = vmatmul.mubr.msk.f32.vlgmr.msra.gmra.mxu0 %vm196_vm2, %v593_v53  ;;  %1430 = vmatpush3.msra.mxu1 %v1244_v54 }
  0x30   : > { %1446 = vmatprep.subr.mxu0 %v1530_v1  ;;  %1406 = vmatprep.mubr.msk.f32.mxu1 %vm1531_vm0, %v1530_v1 }
  0x31   : > { %1431 = vmatprep.subr.mxu1 %v1530_v1  ;;  %1447 = vmatpush3.msra.mxu0 %v1251_v58 }
  0x32   : > { %1407 = vmatmul.mubr.msk.f32.gmra.mxu1 %vm196_vm2, %v490_v59  ;;  %1423 = vmatprep.mubr.msk.f32.mxu0 %vm1531_vm0, %v1530_v1 }
  0x33   : > { %1432 = vmatpush3.msra.mxu1 %v1243_v62  ;;  %1424 = vmatmul.mubr.msk.f32.gmra.mxu0 %vm196_vm2, %v595_v63 }
  0x34   : > { %1448 = vmatprep.subr.mxu0 %v1530_v1  ;;  %1433 = vmatprep.subr.mxu1 %v1530_v1 }
  0x35   : > { %1449 = vmatpush3.msra.mxu0 %v1250_v3  ;;  %1409 = vmatprep.mubr.msk.f32.mxu1 %vm1531_vm0, %v1530_v1 }
  0x36   : > { %1434 = vmatpush3.msra.mxu1 %v1242_v7  ;;  %1426 = vmatprep.mubr.msk.f32.mxu0 %vm1531_vm0, %v1530_v1 }
  0x37   : > { %1410 = vmatmul.mubr.msk.f32.gmra.mxu1 %vm196_vm2, %v492_v8  ;;  %1450 = vmatprep.subr.mxu0 %v1530_v1 }
  0x38   : > { %1427 = vmatmul.mubr.msk.f32.gmra.mxu0 %vm196_vm2, %v597_v11  ;;  %1435 = vmatprep.subr.mxu1 %v1530_v1 }
  0x39   : > { %1451 = vmatpush3.msra.mxu0 %v1249_v12  ;;  %1436 = vmatpush3.msra.mxu1 %v1241_v13 }
  0x3a   : > { %1437 = vmatprep.mubr.msk.f32.mxu1 %vm1531_vm0, %v1530_v1  ;;  %1452 = vmatprep.subr.mxu0 %v1530_v1 }
  0x3b   : > { %1438 = vmatmul.mubr.msk.f32.vlgmr.msra.gmra.mxu1 %vm196_vm2, %v1595_v9  ;;  %1453 = vmatpush3.msra.mxu0 %v1248_v17  ;;  %v1257_v9 = vld [vmem:[%s1884_s1 + $0xf0] sm:$0xff] }
  0x3c   : > { %1454 = vmatprep.mubr.msk.f32.mxu0 %vm1531_vm0, %v1530_v1  ;;  %1463 = vmatprep.subr.mxu1 %v1530_v1 }
  0x3d   : > { %1455 = vmatmul.mubr.msk.f32.vlgmr.msra.gmra.mxu0 %vm196_vm2, %v797_v19  ;;  %1464 = vmatpush3.msra.mxu1 %v1258_v20 }
  0x3e   : > { %1480 = vmatprep.subr.mxu0 %v1530_v1  ;;  %1440 = vmatprep.mubr.msk.f32.mxu1 %vm1531_vm0, %v1530_v1 }
  0x3f   : > { %1465 = vmatprep.subr.mxu1 %v1530_v1  ;;  %1481 = vmatpush3.msra.mxu0 %v1265_v23 }
  0x40   : > { %1441 = vmatmul.mubr.msk.f32.gmra.mxu1 %vm196_vm2, %v1598_v10  ;;  %1457 = vmatprep.mubr.msk.f32.mxu0 %vm1531_vm0, %v1530_v1  ;;  %v900_v10 = vrot.slane %v781_v5, 5 }
  0x41   : > { %1466 = vmatpush3.msra.mxu1 %v1257_v9  ;;  %1458 = vmatmul.mubr.msk.f32.gmra.mxu0 %vm196_vm2, %v799_v25 }
  0x42   : > { %1482 = vmatprep.subr.mxu0 %v1530_v1  ;;  %1467 = vmatprep.subr.mxu1 %v1530_v1  ;;  %v902_v37 = vsel %vm899_vm7, %v900_v10, %v901_v30 }
  0x43   : > { %1483 = vmatpush3.msra.mxu0 %v1264_v27  ;;  %1443 = vmatprep.mubr.msk.f32.mxu1 %vm1531_vm0, %v1530_v1 }
  0x44   : > { %1468 = vmatpush3.msra.mxu1 %v1256_v29  ;;  %1460 = vmatprep.mubr.msk.f32.mxu0 %vm1531_vm0, %v1530_v1 }
  0x45   : > { %1444 = vmatmul.mubr.msk.f32.gmra.mxu1 %vm196_vm2, %v583_v57  ;;  %1484 = vmatprep.subr.mxu0 %v1530_v1 }
  0x46   : > { %1461 = vmatmul.mubr.msk.f32.gmra.mxu0 %vm196_vm2, %v801_v31  ;;  %1469 = vmatprep.subr.mxu1 %v1530_v1 }
  0x47   : > { %1485 = vmatpush3.msra.mxu0 %v1263_v33  ;;  %1470 = vmatpush3.msra.mxu1 %v1255_v34 }
  0x48   : > { %1471 = vmatprep.mubr.msk.f32.mxu1 %vm1531_vm0, %v1530_v1  ;;  %1486 = vmatprep.subr.mxu0 %v1530_v1 }
  0x49   : > { %1472 = vmatmul.mubr.msk.f32.vlgmr.msra.gmra.mxu1 %vm196_vm2, %v902_v37  ;;  %1487 = vmatpush3.msra.mxu0 %v1262_v38 }
  0x4a   : > { %1488 = vmatprep.mubr.msk.f32.mxu0 %vm1531_vm0, %v1530_v1  ;;  %1474 = vmatprep.mubr.msk.f32.mxu1 %vm1531_vm0, %v1530_v1 }
  0x4b   : > { %1489 = vmatmul.mubr.msk.f32.vlgmr.msra.gmra.mxu0 %vm196_vm2, %v1006_v6 }
  0x4c   : > { %1491 = vmatprep.mubr.msk.f32.mxu0 %vm1531_vm0, %v1530_v1 }
  0x4d   : > { %1475 = vmatmul.mubr.msk.f32.gmra.mxu1 %vm196_vm2, %v904_v42 }
  0x4e   : > { %1477 = vmatprep.mubr.msk.f32.mxu1 %vm1531_vm0, %v1530_v1 }
  0x4f   : > { %1492 = vmatmul.mubr.msk.f32.gmra.mxu0 %vm196_vm2, %v1008_v44 }
  0x50   : > { %1494 = vmatprep.mubr.msk.f32.mxu0 %vm1531_vm0, %v1530_v1 }
  0x51   : > { %1478 = vmatmul.mubr.msk.f32.gmra.mxu1 %vm196_vm2, %v906_v46 }
  0x53   : > { %1495 = vmatmul.mubr.msk.f32.gmra.mxu0 %vm196_vm2, %v1010_v47 }
  0xd6   : > { %v269_v48 = vpop.f32.mrf.mxu0  ;;  %v279_v49 = vpop.f32.mrf.mxu1 }
  0xd8   : > { %v1354_v50 = vpop.f32.mrf.mxu0  ;;  %v1360_v51 = vpop.f32.mrf.mxu1 }
  0xd9   : > { %v1269_v50 = vld [vmem:[%s1885_s2] ss:$0 sm:$0xff] }
  0xdb   : > { %v274_v52 = vpop.f32.mrf.mxu0 }
  0xdd   : > { %v1357_v53 = vpop.f32.mrf.mxu0 }
  0xdf   : > { %v355_v54 = vpop.f32.mrf.mxu1 }
  0xe0   : > { %v356_v14 = vadd.f32 %v355_v54, %v269_v48 }
  0xe1   : > { %v457_v55 = vpop.f32.mrf.mxu0  ;;  %v1371_v56 = vpop.f32.mrf.mxu1 }
  0xe2   : > { %v471_v19 = vadd.f32 %v457_v55, %v356_v14 }
  0xe3   : > { %v1388_v57 = vpop.f32.mrf.mxu0 }
  0xe4   : > { %v360_v58 = vpop.f32.mrf.mxu1 }
  0xe5   : > { %v462_v59 = vpop.f32.mrf.mxu0  ;;  %v361_v20 = vadd.f32 %v360_v58, %v274_v52 }
  0xe6   : > { %v1374_v60 = vpop.f32.mrf.mxu1 }
  0xe7   : > { %v1391_v1 = vpop.f32.mrf.mxu0  ;;  %v472_v9 = vadd.f32 %v462_v59, %v361_v20 }
  0xe9   : > { %v365_v61 = vpop.f32.mrf.mxu1 }
  0xea   : > { %v467_v62 = vpop.f32.mrf.mxu0  ;;  %v366_v25 = vadd.f32 %v365_v61, %v279_v49 }
  0xeb   : > { %v1377_v63 = vpop.f32.mrf.mxu1 }
  0xec   : > { %v1394_v0 = vpop.f32.mrf.mxu0  ;;  %v473_v31 = vadd.f32 %v467_v62, %v366_v25 }
  0xed   : > { %v565_v2 = vpop.f32.mrf.mxu1 }
  0xee   : > { %v579_v23 = vadd.f32 %v565_v2, %v471_v19 }
  0xef   : > { %v670_v3 = vpop.f32.mrf.mxu0  ;;  %v1405_v4 = vpop.f32.mrf.mxu1 }
  0xf0   : > { %v684_v28 = vadd.f32 %v670_v3, %v579_v23 }
  0xf1   : > { %v1422_v5 = vpop.f32.mrf.mxu0 }
  0xf2   : > { %v570_v7 = vpop.f32.mrf.mxu1  ;;  %v1119_v5 = vlaneseq }
  0xf3   : > { %v675_v8 = vpop.f32.mrf.mxu0  ;;  %v580_v29 = vadd.f32 %v570_v7, %v472_v9 }
  0xf4   : > { %v1408_v11 = vpop.f32.mrf.mxu1  ;;  %v1120_v7 = vand.u32 127, %v1119_v5  ;;  %v1138_v19 = vshrl.u32 %v1119_v5, 7 }
  0xf5   : > { %v1425_v12 = vpop.f32.mrf.mxu0  ;;  %v685_v34 = vadd.f32 %v675_v8, %v580_v29 }
  0xf6   : > { %v1121_v8 = vcvt.s32.f32 %v1120_v7  ;;  %v1148_v23 = vadd.s32 4294967280, %v1120_v7  ;;  %v1139_v25 = vsub.s32 %v1120_v7, %v1138_v19 }
  0xf7   : > { %v575_v13 = vpop.f32.mrf.mxu1 }
  0xf8   : > { %v680_v15 = vpop.f32.mrf.mxu0  ;;  %v581_v35 = vadd.f32 %v575_v13, %v473_v31 }
  0xf9   : > { %v1411_v16 = vpop.f32.mrf.mxu1 }
  0xfa   : > { %v1428_v17 = vpop.f32.mrf.mxu0  ;;  %v686_v41 = vadd.f32 %v680_v15, %v581_v35 }
  0xfb   : > { %v760_v18 = vpop.f32.mrf.mxu1 }
  0xfc   : > { %v774_v32 = vadd.f32 %v760_v18, %v684_v28  ;;  %v1141_v18 = vadd.s32 4294967288, %v1120_v7  ;;  %v1151_v28 = vsub.s32 %v1148_v23, %v1138_v19 }
  0xfd   : > { %v874_v21 = vpop.f32.mrf.mxu0  ;;  %v1439_v22 = vpop.f32.mrf.mxu1 }
  0xfe   : > { %v888_v38 = vadd.f32 %v874_v21, %v774_v32 }
  0xff   : > { %v1456_v24 = vpop.f32.mrf.mxu0 }
 0x100   : > { %v765_v26 = vpop.f32.mrf.mxu1  ;;  %v1144_v24 = vsub.s32 %v1141_v18, %v1138_v19 }
 0x101   : > { %v879_v27 = vpop.f32.mrf.mxu0  ;;  %v775_v39 = vadd.f32 %v765_v26, %v685_v34 }
 0x102   : > { %v1442_v10 = vpop.f32.mrf.mxu1 }
 0x103   : > { %v1459_v30 = vpop.f32.mrf.mxu0  ;;  %v889_v45 = vadd.f32 %v879_v27, %v775_v39 }
 0x105   : > { %v770_v33 = vpop.f32.mrf.mxu1 }
 0x106   : > { %v884_v36 = vpop.f32.mrf.mxu0  ;;  %v776_v46 = vadd.f32 %v770_v33, %v686_v41 }
 0x107   : > { %v1445_v37 = vpop.f32.mrf.mxu1 }
 0x108   : > { %v1462_v40 = vpop.f32.mrf.mxu0  ;;  %v890_v55 = vadd.f32 %v884_v36, %v776_v46 }
 0x109   : > { %v979_v6 = vpop.f32.mrf.mxu1 }
 0x10a   : > { %v993_v42 = vadd.f32 %v979_v6, %v888_v38 }
 0x10b   : > { %v1083_v43 = vpop.f32.mrf.mxu0  ;;  %v1473_v44 = vpop.f32.mrf.mxu1 }
 0x10c   : > { %v1097_v47 = vadd.f32 %v1083_v43, %v993_v42 }
 0x10d   : > { %v1490_v48 = vpop.f32.mrf.mxu0  ;;  %v984_v49 = vpop.f32.mrf.mxu1 }
 0x10e   : > { %v1101_v51 = vmul.f32 2.0, %v1097_v47  ;;  %v994_v52 = vadd.f32 %v984_v49, %v889_v45 }
 0x10f   : > { %v1088_v53 = vpop.f32.mrf.mxu0  ;;  %v1476_v54 = vpop.f32.mrf.mxu1 }
 0x110   : > { %v1098_v56 = vadd.f32 %v1088_v53, %v994_v52  ;;  %v1110_v57 = vsub.f32 %v1269_v50, %v1101_v51 }
 0x111   : > { %v1493_v58 = vpop.f32.mrf.mxu0  ;;  %v989_v59 = vpop.f32.mrf.mxu1 }
 0x112   : > { %v1102_v60 = vmul.f32 2.0, %v1098_v56  ;;  %v995_v1 = vadd.f32 %v989_v59, %v890_v55  ;;  %1113 = vmin.xlane.f32.xlu0 %v1110_v57 }
 0x113   : > { %v1093_v61 = vpop.f32.mrf.mxu0  ;;  %v1479_v62 = vpop.f32.mrf.mxu1 }
 0x114   : > { %v1099_v63 = vadd.f32 %v1093_v61, %v995_v1  ;;  %v1111_v0 = vsub.f32 %v1269_v50, %v1102_v60 }
 0x115   : > { %v1496_v2 = vpop.f32.mrf.mxu0 }
 0x116   : > { %v1103_v3 = vmul.f32 2.0, %v1099_v63  ;;  %1115 = vmin.xlane.f32.xlu0 %v1111_v0 }
 0x118   : > { %v1112_v4 = vsub.f32 %v1269_v50, %v1103_v3 }
 0x11a   : > { %1117 = vmin.xlane.f32.xlu1 %v1112_v4 }
 0x19b   : > { %v1114_v11 = vpop.xlane.xlu0 %1113 }
 0x19c   : > { %vm1122_vm8 = vcmp.le.f32.partialorder %v1110_v57, %v1114_v11 }
 0x19d   : > { %v1125_v12 = vsel %vm1122_vm8, %v1121_v8, 128.0 }
 0x19e   : > { %1128 = vmin.xlane.f32.xlu1 %v1125_v12 }
 0x19f   : > { %v1116_v13 = vpop.xlane.xlu0 %1115 }
 0x1a0   : > { %vm1123_vm9 = vcmp.le.f32.partialorder %v1111_v0, %v1116_v13 }
 0x1a1   : > { %v1126_v14 = vsel %vm1123_vm9, %v1121_v8, 128.0 }
 0x1a2   : > { %1130 = vmin.xlane.f32.xlu0 %v1126_v14 }
 0x1a3   : > { %v1118_v15 = vpop.xlane.xlu1 %1117 }
 0x1a4   : > { %vm1124_vm10 = vcmp.le.f32.partialorder %v1112_v4, %v1118_v15 }
 0x1a5   : > { %v1127_v16 = vsel %vm1124_vm10, %v1121_v8, 128.0 }
 0x1a6   : > { %1132 = vmin.xlane.f32.xlu1 %v1127_v16 }
 0x227   : > { %v1129_v17 = vpop.xlane.xlu1 %1128 }
 0x228   : > { %v1506_v20 = vtrunc.f32 %v1129_v17 }
 0x22a   : > { %v1507_v26 = vcvt.f32.s32 %v1506_v20 }
 0x22b   : > { %v1131_v21 = vpop.xlane.xlu0 %1130 }
 0x22c   : > { %v1508_v22 = vtrunc.f32 %v1131_v21  ;;  %v1140_v31 = vrot.slane %v1507_v26, %v1139_v25 }
 0x22e   : > { %v1509_v9 = vcvt.f32.s32 %v1508_v22 }
 0x22f   : > { %v1133_v27 = vpop.xlane.xlu1 %1132 }
 0x230   : > { %v1510_v29 = vtrunc.f32 %v1133_v27  ;;  %v1145_v10 = vrot.slane %v1509_v9, %v1144_v24 }
 0x232   : > { %v1511_v30 = vcvt.f32.s32 %v1510_v29  ;;  %v1147_v33 = vsel %vm1146_vm11, %v1145_v10, %v1140_v31 }
 0x234   : > { %v1152_v32 = vrot.slane %v1511_v30, %v1151_v28 }
 0x236   : > { %v1154_v34 = vsel %vm1153_vm12, %v1152_v32, %v1147_v33 }
 0x237   : > { %1156 = vst.msk [vmem:[%s166_s20] sm:$0x1] %vm1155_vm13, %v1154_v34 }
 0x238 PF: > { %s13_s12 = sadd.s32 1, %s1528_s12  }
 0x239   : > { %p10_p4 = scmp.ge.s32.totalorder %s13_s12, 4  }
 0x23b   :  { %12 = sbr.rel (!%p10_p4) target bundleno = 1 (0x1), region = 70 }

</bundles_post_ra>
